<compile_context>
chip_gen: v7x
topology: tpu7x:2x2x1
jax: 0.10.0
libtpu: 0.0.40
codegen_flags: <defaults>
</compile_context>

<pallas_src>
import functools
import math

import jax
import jax.numpy as jnp
from jax.experimental import pallas as pl
from jax.experimental.pallas import tpu as pltpu

LN_EPS = 1e-6  # timm ViT uses 1e-6 (PyTorch nn.LayerNorm default would be 1e-5)


# ----------------------------------------------------------------------------
# Stitch-config generation (pure-python port of get_stitch_configs_bidirection)
# ----------------------------------------------------------------------------
def get_stitch_configs_bidirection(depths):
    depths = sorted(depths)
    total_configs = [{'comb_id': [0]}, {'comb_id': [1]}]
    num_stitches = depths[0]

    sl_configs = []
    for i in range(num_stitches):
        sl_configs.append({'comb_id': [0, 1],
                           'stitch_cfgs': [[i, (i + 1) * (depths[1] // depths[0])]],
                           'stitch_layer_ids': [i]})

    ls_configs = []
    lsl_confgs = []
    # torch F.interpolate(mode='nearest') on arange(depths[0]) resized to depths[1]
    end_mapping_ids = [(i * depths[0]) // depths[1] for i in range(depths[1])]
    for i in range(depths[1]):
        if depths[1] != depths[0]:
            if i % 2 == 1 and i < depths[1] - 1:
                ls_configs.append({'comb_id': [1, 0],
                                   'stitch_cfgs': [[i, end_mapping_ids[i] + 1]],
                                   'stitch_layer_ids': [i // (depths[1] // depths[0])]})
        elif i < depths[1] - 1:
            ls_configs.append({'comb_id': [1, 0],
                               'stitch_cfgs': [[i, end_mapping_ids[i] + 1]],
                               'stitch_layer_ids': [i // (depths[1] // depths[0])]})

    for ls_cfg in ls_configs:
        for sl_cfg in sl_configs:
            if sl_cfg['stitch_layer_ids'][0] == depths[0] - 1:
                continue
            if sl_cfg['stitch_cfgs'][0][0] >= ls_cfg['stitch_cfgs'][0][1]:
                lsl_confgs.append({'comb_id': [1, 0, 1],
                                   'stitch_cfgs': [ls_cfg['stitch_cfgs'][0], sl_cfg['stitch_cfgs'][0]],
                                   'stitch_layer_ids': ls_cfg['stitch_layer_ids'] + sl_cfg['stitch_layer_ids']})

    sls_configs = []
    for sl_cfg in sl_configs:
        for ls_cfg in ls_configs:
            if ls_cfg['stitch_cfgs'][0][0] >= sl_cfg['stitch_cfgs'][0][1]:
                sls_configs.append({'comb_id': [0, 1, 0],
                                    'stitch_cfgs': [sl_cfg['stitch_cfgs'][0], ls_cfg['stitch_cfgs'][0]],
                                    'stitch_layer_ids': sl_cfg['stitch_layer_ids'] + ls_cfg['stitch_layer_ids']})

    total_configs += sl_configs + ls_configs + lsl_confgs + sls_configs

    anchor_ids, sl_ids, ls_ids, lsl_ids, sls_ids = [], [], [], [], []
    for i, cfg in enumerate(total_configs):
        comb_id = cfg['comb_id']
        if len(comb_id) == 1:
            anchor_ids.append(i)
            continue
        if len(comb_id) == 2:
            route = []
            front, end = cfg['stitch_cfgs'][0]
            route.append([0, front])
            route.append([end, depths[comb_id[-1]]])
            cfg['route'] = route
            if comb_id == [0, 1] and front != 11:
                sl_ids.append(i)
            elif comb_id == [1, 0]:
                ls_ids.append(i)
        if len(comb_id) == 3:
            route = []
            front_1, end_1 = cfg['stitch_cfgs'][0]
            front_2, end_2 = cfg['stitch_cfgs'][1]
            route.append([0, front_1])
            route.append([end_1, front_2])
            route.append([end_2, depths[comb_id[-1]]])
            cfg['route'] = route
            if comb_id == [1, 0, 1]:
                lsl_ids.append(i)
            elif comb_id == [0, 1, 0]:
                sls_ids.append(i)
        cfg['stitch_layer_ids'].append(-1)

    model_combos = [(0, 1), (1, 0)]
    return (total_configs, model_combos, [len(sl_configs), len(ls_configs)],
            anchor_ids, sl_ids, ls_ids, lsl_ids, sls_ids)


# ----------------------------------------------------------------------------
# BlockSpec helpers
# ----------------------------------------------------------------------------
def _bcast_spec(a):
    """Full-array block broadcast across the 1-D batch grid (weights / biases)."""
    nd = a.ndim
    return pl.BlockSpec(a.shape, lambda b, _nd=nd: (0,) * _nd)


_PARALLEL1 = pltpu.CompilerParams(dimension_semantics=("parallel",))


# ----------------------------------------------------------------------------
# Fused Pallas kernels
# ----------------------------------------------------------------------------
def _patch_embed_kernel(p_ref, w_ref, b_ref, pos_ref, o_ref):
    # p: [N, C*P*P] patches; w: [C*P*P, D] bf16; fused: linear + bias + pos-embed add.
    p = p_ref[0].astype(jnp.bfloat16)
    y = jnp.dot(p, w_ref[...], preferred_element_type=jnp.float32)
    o_ref[0] = (y + b_ref[...] + pos_ref[0]).astype(o_ref.dtype)


def _layernorm_f32(x, g, b, eps):
    mu = jnp.mean(x, axis=-1, keepdims=True)
    var = jnp.mean(jnp.square(x - mu), axis=-1, keepdims=True)
    return (x - mu) * jax.lax.rsqrt(var + eps) * g + b


def _transformer_block_kernel(x_ref, g1_ref, beta1_ref,
                              wq_ref, wk_ref, wv_ref, bq_ref, bk_ref, bv_ref,
                              wp_ref, bp_ref,
                              g2_ref, beta2_ref, w1_ref, b1_ref, w2_ref, b2_ref,
                              o_ref, *, num_heads, scale, eps):
    # One batch element per grid step.  Full transformer block fused in VMEM:
    #   LN1 -> per-head QKV -> softmax attn -> out-proj -> +res -> LN2 -> fc1+GELU -> fc2 -> +res
    x = x_ref[0].astype(jnp.float32)                       # [N, D]
    N, D = x.shape

    # --- attention sub-block -------------------------------------------------
    h = _layernorm_f32(x, g1_ref[...], beta1_ref[...], eps)
    h16 = h.astype(jnp.bfloat16)                           # bf16 MXU operand

    acc = jnp.zeros((N, D), jnp.float32)
    for hh in range(num_heads):                            # statically unrolled
        qh = (jnp.dot(h16, wq_ref[hh], preferred_element_type=jnp.float32)
              + bq_ref[hh]) * scale                        # scale folded into q ([N, Dh] mul)
        kh = jnp.dot(h16, wk_ref[hh], preferred_element_type=jnp.float32) + bk_ref[hh]
        vh = jnp.dot(h16, wv_ref[hh], preferred_element_type=jnp.float32) + bv_ref[hh]
        # scores = q @ k^T via contraction on the last dim of both (no explicit transpose)
        s = jax.lax.dot_general(qh, kh, (((1,), (1,)), ((), ())),
                                preferred_element_type=jnp.float32)      # [N, N]
        s = s - jnp.max(s, axis=-1, keepdims=True)
        p = jnp.exp(s)
        p = p * pl.reciprocal(jnp.sum(p, axis=-1, keepdims=True), approx=True)
        oh = jnp.dot(p, vh, preferred_element_type=jnp.float32)          # [N, Dh]
        # fold this head straight into the output projection (avoids concat of heads)
        acc = acc + jnp.dot(oh.astype(jnp.bfloat16), wp_ref[hh],
                            preferred_element_type=jnp.float32)          # [N, D]
    x = x + acc + bp_ref[...]                              # residual 1 (stays in VMEM/regs)

    # --- MLP sub-block -------------------------------------------------------
    h2 = _layernorm_f32(x, g2_ref[...], beta2_ref[...], eps)
    h1 = jnp.dot(h2.astype(jnp.bfloat16), w1_ref[...],
                 preferred_element_type=jnp.float32) + b1_ref[...]
    # TODO(synk): PyTorch nn.GELU() default is exact erf GELU; tanh approximation used here.
    h1 = jax.nn.gelu(h1, approximate=True)
    h3 = jnp.dot(h1.astype(jnp.bfloat16), w2_ref[...],
                 preferred_element_type=jnp.float32) + b2_ref[...]
    o_ref[0] = (x + h3).astype(o_ref.dtype)                # residual 2


def _stitch_kernel(x_ref, w_ref, b_ref, o_ref):
    x = x_ref[0].astype(jnp.bfloat16)                      # [N, Din]
    y = jnp.dot(x, w_ref[...], preferred_element_type=jnp.float32) + b_ref[...]
    o_ref[0] = y.astype(o_ref.dtype)


def _norm_head_kernel(x_ref, g_ref, beta_ref, w_ref, bh_ref, o_ref, *, eps):
    # One batch element per grid step: final LN -> token mean pool -> classifier head.
    x = x_ref[0].astype(jnp.float32)                       # [N, D]
    h = _layernorm_f32(x, g_ref[...], beta_ref[...], eps)
    pooled = jnp.mean(h, axis=0, keepdims=True)            # [1, D]
    y = jnp.dot(pooled.astype(jnp.bfloat16), w_ref[...],
                preferred_element_type=jnp.float32) + bh_ref[...]
    o_ref[0] = y.astype(o_ref.dtype)


# ----------------------------------------------------------------------------
# Kernel wrappers (grid over batch, parallel semantics)
# ----------------------------------------------------------------------------
def patch_embed_forward(anc, x):
    B, C, Himg, Wimg = x.shape
    P = anc["patch_size"]
    D = anc["embed_dim"]
    # NCHW -> [B, N, C*P*P] patch extraction (pure layout glue; Conv2d k=s=P == unfold + linear)
    p = x.reshape(B, C, Himg // P, P, Wimg // P, P)
    p = jnp.transpose(p, (0, 2, 4, 1, 3, 5)).reshape(B, (Himg // P) * (Wimg // P), C * P * P)
    N, CPP = p.shape[1], p.shape[2]
    xspec = pl.BlockSpec((1, N, CPP), lambda b: (b, 0, 0))
    ospec = pl.BlockSpec((1, N, D), lambda b: (b, 0, 0))
    return pl.pallas_call(
        _patch_embed_kernel,
        grid=(B,),
        in_specs=[xspec, _bcast_spec(anc["patch_w"]), _bcast_spec(anc["patch_b"]),
                  _bcast_spec(anc["pos_embed"])],
        out_specs=ospec,
        out_shape=jax.ShapeDtypeStruct((B, N, D), jnp.float32),
        compiler_params=_PARALLEL1,
    )(p, anc["patch_w"], anc["patch_b"], anc["pos_embed"])


def transformer_block_forward(x, blk, num_heads, *, eps=LN_EPS):
    B, N, D = x.shape
    Dh = D // num_heads
    scale = 1.0 / math.sqrt(Dh)
    xspec = pl.BlockSpec((1, N, D), lambda b: (b, 0, 0))
    args = [x,
            blk["ln1_g"], blk["ln1_b"],
            blk["wq"], blk["wk"], blk["wv"], blk["bq"], blk["bk"], blk["bv"],
            blk["wp"], blk["bp"],
            blk["ln2_g"], blk["ln2_b"], blk["w1"], blk["b1"], blk["w2"], blk["b2"]]
    return pl.pallas_call(
        functools.partial(_transformer_block_kernel, num_heads=num_heads, scale=scale, eps=eps),
        grid=(B,),
        in_specs=[xspec] + [_bcast_spec(a) for a in args[1:]],
        out_specs=xspec,
        out_shape=jax.ShapeDtypeStruct((B, N, D), jnp.float32),
        compiler_params=_PARALLEL1,
    )(*args)


def stitch_forward(x, layer):
    B, N, Din = x.shape
    Dout = layer["w"].shape[1]
    xspec = pl.BlockSpec((1, N, Din), lambda b: (b, 0, 0))
    ospec = pl.BlockSpec((1, N, Dout), lambda b: (b, 0, 0))
    return pl.pallas_call(
        _stitch_kernel,
        grid=(B,),
        in_specs=[xspec, _bcast_spec(layer["w"]), _bcast_spec(layer["b"])],
        out_specs=ospec,
        out_shape=jax.ShapeDtypeStruct((B, N, Dout), jnp.float32),
        compiler_params=_PARALLEL1,
    )(x, layer["w"], layer["b"])


def norm_head_forward(anc, x, *, eps=LN_EPS):
    B, N, D = x.shape
    C = anc["head_w"].shape[1]
    xspec = pl.BlockSpec((1, N, D), lambda b: (b, 0, 0))
    ospec = pl.BlockSpec((1, 1, C), lambda b: (b, 0, 0))
    out = pl.pallas_call(
        functools.partial(_norm_head_kernel, eps=eps),
        grid=(B,),
        in_specs=[xspec, _bcast_spec(anc["norm_g"]), _bcast_spec(anc["norm_b"]),
                  _bcast_spec(anc["head_w"]), _bcast_spec(anc["head_b"])],
        out_specs=ospec,
        out_shape=jax.ShapeDtypeStruct((B, 1, C), jnp.float32),
        compiler_params=_PARALLEL1,
    )(x, anc["norm_g"], anc["norm_b"], anc["head_w"], anc["head_b"])
    return out.reshape(B, C)


def selective_forward(anc, t, start, end):
    for blk in anc["blocks"][start:end]:
        t = transformer_block_forward(t, blk, anc["num_heads"])
    return t


# ----------------------------------------------------------------------------
# Synthetic ViT anchors (deterministic init; weights stored pre-transposed in bf16)
# ----------------------------------------------------------------------------
def _randn(key, shape, scale=0.02, dtype=jnp.float32):
    return (jax.random.normal(key, shape, jnp.float32) * scale).astype(dtype)


def _make_linear(key, in_f, out_f):
    kw, kb = jax.random.split(key)
    # pre-transposed [K, N] bf16 weight; f32 bias [1, N]
    return {"w": _randn(kw, (in_f, out_f), dtype=jnp.bfloat16),
            "b": _randn(kb, (1, out_f))}


def init_anchor(key, *, embed_dim, depth, num_heads, mlp_ratio,
                in_chans, img_size, patch_size, num_classes):
    D, H = embed_dim, num_heads
    Dh = D // H
    n_tok = (img_size // patch_size) ** 2
    hidden = int(D * mlp_ratio)
    cpp = in_chans * patch_size * patch_size
    keys = jax.random.split(key, 5)
    anc = {
        "embed_dim": D, "depth": depth, "num_heads": H,
        "patch_size": patch_size, "num_tokens": n_tok,
        "patch_w": _randn(keys[0], (cpp, D), dtype=jnp.bfloat16),
        "patch_b": _randn(keys[1], (1, D)),
        "pos_embed": _randn(keys[2], (1, n_tok, D)),
        "norm_g": jnp.ones((1, D), jnp.float32),
        "norm_b": jnp.zeros((1, D), jnp.float32),
        "head_w": _randn(keys[3], (D, num_classes), dtype=jnp.bfloat16),
        "head_b": _randn(keys[4], (1, num_classes)),
        "blocks": [],
    }
    for d in range(depth):
        bkeys = jax.random.split(jax.random.fold_in(key, 100 + d), 10)
        anc["blocks"].append({
            "ln1_g": jnp.ones((1, D), jnp.float32), "ln1_b": jnp.zeros((1, D), jnp.float32),
            # per-head pre-transposed attention weights: [H, D, Dh] and [H, Dh, D]
            "wq": _randn(bkeys[0], (H, D, Dh), dtype=jnp.bfloat16),
            "wk": _randn(bkeys[1], (H, D, Dh), dtype=jnp.bfloat16),
            "wv": _randn(bkeys[2], (H, D, Dh), dtype=jnp.bfloat16),
            "bq": _randn(bkeys[3], (H, 1, Dh)),
            "bk": _randn(bkeys[4], (H, 1, Dh)),
            "bv": _randn(bkeys[5], (H, 1, Dh)),
            "wp": _randn(bkeys[6], (H, Dh, D), dtype=jnp.bfloat16),
            "bp": _randn(bkeys[7], (1, D)),
            "ln2_g": jnp.ones((1, D), jnp.float32), "ln2_b": jnp.zeros((1, D), jnp.float32),
            "w1": _randn(bkeys[8], (D, hidden), dtype=jnp.bfloat16),
            "b1": jnp.zeros((1, hidden), jnp.float32),
            "w2": _randn(bkeys[9], (hidden, D), dtype=jnp.bfloat16),
            "b2": jnp.zeros((1, D), jnp.float32),
        })
    return anc


# ----------------------------------------------------------------------------
# SNNetv2
# ----------------------------------------------------------------------------
class SNNetv2:
    def __init__(self, anchors, include_sl=True, include_ls=True,
                 include_lsl=True, include_sls=True, lora_r=0, key=None):
        # TODO(synk): lora_r > 0 (LoRA branch of Linear) not exercised; stitch layers are plain linears.
        self.anchors = anchors
        self.depths = [len(anc["blocks"]) for anc in anchors]
        (total_configs, model_combos, num_stitches, anchor_ids,
         sl_ids, ls_ids, lsl_ids, sls_ids) = get_stitch_configs_bidirection(self.depths)

        key = key if key is not None else jax.random.PRNGKey(42)
        self.stitch_layers = []
        for i, (comb, num_sth) in enumerate(zip(model_combos, num_stitches)):
            front, end = comb
            ks = jax.random.split(jax.random.fold_in(key, i), max(num_sth, 1))
            layers = [_make_linear(ks[j], anchors[front]["embed_dim"],
                                   anchors[end]["embed_dim"]) for j in range(num_sth)]
            layers.append(None)  # nn.Identity
            self.stitch_layers.append(layers)

        # TODO(synk): initialize_stitching_weights / ps_inv (torch.linalg.pinv least-squares init)
        # is an offline init path, not part of forward; stitch weights stay randomly initialized.
        self.stitch_configs = {i: cfg for i, cfg in enumerate(total_configs)}
        self.all_cfgs = list(anchor_ids)
        if include_sl:
            self.all_cfgs += sl_ids
        if include_ls:
            self.all_cfgs += ls_ids
        if include_lsl:
            self.all_cfgs += lsl_ids
        if include_sls:
            self.all_cfgs += sls_ids
        self.num_configs = len(self.stitch_configs)
        self.stitch_config_id = 0
        self._jit_cache = {}

    def reset_stitch_id(self, stitch_config_id):
        self.stitch_config_id = stitch_config_id

    def _apply_stitch(self, model_id, layer_id, x):
        layer = self.stitch_layers[model_id][layer_id]
        if layer is None:            # nn.Identity
            return x
        return stitch_forward(x, layer)

    def _forward_impl(self, x, cfg_id):
        cfg = self.stitch_configs[cfg_id]
        comb_id = cfg["comb_id"]
        if len(comb_id) == 1:
            anc = self.anchors[comb_id[0]]
            t = patch_embed_forward(anc, x)
            t = selective_forward(anc, t, 0, anc["depth"])
            return norm_head_forward(anc, t)
        route = cfg["route"]
        stitch_layer_ids = cfg["stitch_layer_ids"]
        t = patch_embed_forward(self.anchors[comb_id[0]], x)
        for i, (model_id, rg) in enumerate(zip(comb_id, route)):
            t = selective_forward(self.anchors[model_id], t, rg[0], rg[1])
            t = self._apply_stitch(model_id, stitch_layer_ids[i], t)
        return norm_head_forward(self.anchors[comb_id[-1]], t)

    def forward(self, x, stitch_cfg_id=None):
        # eval path (self.training == False): fixed stitch_config_id; training-time random
        # sampling (sampling_stitch_config / np.random) is host-side and not implemented here.
        cfg_id = self.stitch_config_id if stitch_cfg_id is None else stitch_cfg_id
        fn = self._jit_cache.get(cfg_id)
        if fn is None:
            fn = jax.jit(functools.partial(self._forward_impl, cfg_id=cfg_id))
            self._jit_cache[cfg_id] = fn
        return fn(x)


# ----------------------------------------------------------------------------
# Demo
# ----------------------------------------------------------------------------
if __name__ == "__main__":
    key = jax.random.PRNGKey(0)
    kx, k0, k1, ks = jax.random.split(key, 4)

    B, C, H, W = 2, 4, 16, 16
    NUM_CLASSES = 10
    x = jax.random.normal(kx, (B, C, H, W), jnp.float32)

    anchor_small = init_anchor(k0, embed_dim=32, depth=2, num_heads=4, mlp_ratio=2.0,
                               in_chans=C, img_size=H, patch_size=4, num_classes=NUM_CLASSES)
    anchor_large = init_anchor(k1, embed_dim=64, depth=4, num_heads=4, mlp_ratio=2.0,
                               in_chans=C, img_size=H, patch_size=4, num_classes=NUM_CLASSES)

    snnet = SNNetv2([anchor_small, anchor_large], key=ks)

    outputs = []
    for cfg_id in snnet.all_cfgs:        # anchors + sl + ls (+ lsl/sls if any) configs
        snnet.reset_stitch_id(cfg_id)
        outputs.append(snnet.forward(x))

    for o in outputs:
        o = jax.block_until_ready(o)
        assert o.shape == (B, NUM_CLASSES), o.shape
        assert bool(jnp.all(jnp.isfinite(o)))

    print("KERNEL_OK")
</pallas_src>

<mosaic_0001>
module attributes {stable_mosaic.version = 11 : i64} {
  func.func @_patch_embed_kernel(%arg0: i32, %arg1: memref<1x16x64xf32, #tpu.memory_space<vmem>>, %arg2: memref<64x32xbf16, #tpu.memory_space<vmem>>, %arg3: memref<1x32xf32, #tpu.memory_space<vmem>>, %arg4: memref<1x16x32xf32, #tpu.memory_space<vmem>>, %arg5: memref<1x16x32xf32, #tpu.memory_space<vmem>>) attributes {dimension_semantics = [#tpu.dimension_semantics<parallel>], iteration_bounds = array<i64: 2>, scalar_prefetch = 0 : i64, scratch_operands = 0 : i64, tpu.core_type = #tpu.core_type<tc>, window_params = [{transform_indices = @transform_0, window_bounds = array<i64: 1, 16, 64>}, {pipeline_mode = #tpu.pipeline_mode<synchronous>, transform_indices = @transform_1, window_bounds = array<i64: 64, 32>}, {pipeline_mode = #tpu.pipeline_mode<synchronous>, transform_indices = @transform_2, window_bounds = array<i64: 1, 32>}, {pipeline_mode = #tpu.pipeline_mode<synchronous>, transform_indices = @transform_3, window_bounds = array<i64: 1, 16, 32>}, {transform_indices = @transform_4, window_bounds = array<i64: 1, 16, 32>}]} {
    %c0 = arith.constant 0 : index
    %c0_0 = arith.constant 0 : index
    %c0_1 = arith.constant 0 : index
    %0 = vector.load %arg1[%c0, %c0_0, %c0_1] : memref<1x16x64xf32, #tpu.memory_space<vmem>>, vector<1x16x64xf32>
    %1 = vector.shape_cast %0 : vector<1x16x64xf32> to vector<16x64xf32>
    %2 = arith.truncf %1 : vector<16x64xf32> to vector<16x64xbf16>
    %c0_2 = arith.constant 0 : index
    %c0_3 = arith.constant 0 : index
    %3 = vector.load %arg2[%c0_2, %c0_3] : memref<64x32xbf16, #tpu.memory_space<vmem>>, vector<64x32xbf16>
    %cst = arith.constant dense<0.000000e+00> : vector<16x32xf32>
    %4 = tpu.matmul %2, %3, %cst {dimension_numbers = #tpu.dot_dimension_numbers<[1], [0], [0], [1], [0, 0, 1, 1], [], []>} : vector<16x64xbf16>, vector<64x32xbf16>, vector<16x32xf32> -> vector<16x32xf32>
    %c0_4 = arith.constant 0 : index
    %c0_5 = arith.constant 0 : index
    %5 = vector.load %arg3[%c0_4, %c0_5] : memref<1x32xf32, #tpu.memory_space<vmem>>, vector<1x32xf32>
    %6 = vector.broadcast %5 : vector<1x32xf32> to vector<16x32xf32>
    %7 = arith.addf %4, %6 : vector<16x32xf32>
    %c0_6 = arith.constant 0 : index
    %c0_7 = arith.constant 0 : index
    %c0_8 = arith.constant 0 : index
    %8 = vector.load %arg4[%c0_6, %c0_7, %c0_8] : memref<1x16x32xf32, #tpu.memory_space<vmem>>, vector<1x16x32xf32>
    %9 = vector.shape_cast %8 : vector<1x16x32xf32> to vector<16x32xf32>
    %10 = arith.addf %7, %9 : vector<16x32xf32>
    %c0_9 = arith.constant 0 : index
    %c0_10 = arith.constant 0 : index
    %c0_11 = arith.constant 0 : index
    %11 = vector.load %arg5[%c0_9, %c0_10, %c0_11] : memref<1x16x32xf32, #tpu.memory_space<vmem>>, vector<1x16x32xf32>
    %12 = vector.shape_cast %11 : vector<1x16x32xf32> to vector<16x32xf32>
    %13 = vector.shape_cast %10 : vector<16x32xf32> to vector<1x16x32xf32>
    tpu.vector_store %arg5[%c0_9, %c0_10, %c0_11], %13 {strides = array<i32>} : memref<1x16x32xf32, #tpu.memory_space<vmem>>, vector<1x16x32xf32>,
    return
  }
  func.func @transform_0(%arg0: i32) -> (i32, i32, i32) {
    %c0_i32 = arith.constant 0 : i32
    %c0_i32_0 = arith.constant 0 : i32
    %c0_i32_1 = arith.constant 0 : i32
    return %arg0, %c0_i32, %c0_i32_0 : i32, i32, i32
  }
  func.func @transform_1(%arg0: i32) -> (i32, i32) {
    %c0_i32 = arith.constant 0 : i32
    %c0_i32_0 = arith.constant 0 : i32
    %c0_i32_1 = arith.constant 0 : i32
    return %c0_i32, %c0_i32_0 : i32, i32
  }
  func.func @transform_2(%arg0: i32) -> (i32, i32) {
    %c0_i32 = arith.constant 0 : i32
    %c0_i32_0 = arith.constant 0 : i32
    %c0_i32_1 = arith.constant 0 : i32
    return %c0_i32, %c0_i32_0 : i32, i32
  }
  func.func @transform_3(%arg0: i32) -> (i32, i32, i32) {
    %c0_i32 = arith.constant 0 : i32
    %c0_i32_0 = arith.constant 0 : i32
    %c0_i32_1 = arith.constant 0 : i32
    %c0_i32_2 = arith.constant 0 : i32
    return %c0_i32, %c0_i32_0, %c0_i32_1 : i32, i32, i32
  }
  func.func @transform_4(%arg0: i32) -> (i32, i32, i32) {
    %c0_i32 = arith.constant 0 : i32
    %c0_i32_0 = arith.constant 0 : i32
    %c0_i32_1 = arith.constant 0 : i32
    return %arg0, %c0_i32, %c0_i32_0 : i32, i32, i32
  }
}

module attributes {stable_mosaic.version = 11 : i64} {
  func.func @_norm_head_kernel(%arg0: i32, %arg1: memref<1x16x32xf32, #tpu.memory_space<vmem>>, %arg2: memref<1x32xf32, #tpu.memory_space<vmem>>, %arg3: memref<1x32xf32, #tpu.memory_space<vmem>>, %arg4: memref<32x10xbf16, #tpu.memory_space<vmem>>, %arg5: memref<1x10xf32, #tpu.memory_space<vmem>>, %arg6: memref<1x1x10xf32, #tpu.memory_space<vmem>>) attributes {dimension_semantics = [#tpu.dimension_semantics<parallel>], iteration_bounds = array<i64: 2>, scalar_prefetch = 0 : i64, scratch_operands = 0 : i64, tpu.core_type = #tpu.core_type<tc>, window_params = [{transform_indices = @transform_0, window_bounds = array<i64: 1, 16, 32>}, {pipeline_mode = #tpu.pipeline_mode<synchronous>, transform_indices = @transform_1, window_bounds = array<i64: 1, 32>}, {pipeline_mode = #tpu.pipeline_mode<synchronous>, transform_indices = @transform_2, window_bounds = array<i64: 1, 32>}, {pipeline_mode = #tpu.pipeline_mode<synchronous>, transform_indices = @transform_3, window_bounds = array<i64: 32, 10>}, {pipeline_mode = #tpu.pipeline_mode<synchronous>, transform_indices = @transform_4, window_bounds = array<i64: 1, 10>}, {transform_indices = @transform_5, window_bounds = array<i64: 1, 1, 10>}]} {
    %c0 = arith.constant 0 : index
    %c0_0 = arith.constant 0 : index
    %c0_1 = arith.constant 0 : index
    %0 = vector.load %arg1[%c0, %c0_0, %c0_1] : memref<1x16x32xf32, #tpu.memory_space<vmem>>, vector<1x16x32xf32>
    %1 = vector.shape_cast %0 : vector<1x16x32xf32> to vector<16x32xf32>
    %c0_2 = arith.constant 0 : index
    %c0_3 = arith.constant 0 : index
    %2 = vector.load %arg2[%c0_2, %c0_3] : memref<1x32xf32, #tpu.memory_space<vmem>>, vector<1x32xf32>
    %c0_4 = arith.constant 0 : index
    %c0_5 = arith.constant 0 : index
    %3 = vector.load %arg3[%c0_4, %c0_5] : memref<1x32xf32, #tpu.memory_space<vmem>>, vector<1x32xf32>
    %cst = arith.constant dense<0.000000e+00> : vector<16xf32>
    %4 = vector.multi_reduction <add>, %1, %cst [1] : vector<16x32xf32> to vector<16xf32>
    %5 = vector.shape_cast %4 : vector<16xf32> to vector<16x1xf32>
    %cst_6 = arith.constant 3.200000e+01 : f32
    %6 = vector.broadcast %cst_6 : f32 to vector<16x1xf32>
    %7 = arith.divf %5, %6 : vector<16x1xf32>
    %8 = vector.broadcast %7 : vector<16x1xf32> to vector<16x32xf32>
    %9 = arith.subf %1, %8 : vector<16x32xf32>
    %10 = arith.mulf %9, %9 : vector<16x32xf32>
    %cst_7 = arith.constant dense<0.000000e+00> : vector<16xf32>
    %11 = vector.multi_reduction <add>, %10, %cst_7 [1] : vector<16x32xf32> to vector<16xf32>
    %12 = vector.shape_cast %11 : vector<16xf32> to vector<16x1xf32>
    %cst_8 = arith.constant 3.200000e+01 : f32
    %13 = vector.broadcast %cst_8 : f32 to vector<16x1xf32>
    %14 = arith.divf %12, %13 : vector<16x1xf32>
    %15 = vector.broadcast %7 : vector<16x1xf32> to vector<16x32xf32>
    %16 = arith.subf %1, %15 : vector<16x32xf32>
    %cst_9 = arith.constant 9.99999997E-7 : f32
    %17 = vector.broadcast %cst_9 : f32 to vector<16x1xf32>
    %18 = arith.addf %14, %17 : vector<16x1xf32>
    %19 = math.rsqrt %18 : vector<16x1xf32>
    %20 = vector.broadcast %19 : vector<16x1xf32> to vector<16x32xf32>
    %21 = arith.mulf %16, %20 : vector<16x32xf32>
    %22 = vector.broadcast %2 : vector<1x32xf32> to vector<16x32xf32>
    %23 = arith.mulf %21, %22 : vector<16x32xf32>
    %24 = vector.broadcast %3 : vector<1x32xf32> to vector<16x32xf32>
    %25 = arith.addf %23, %24 : vector<16x32xf32>
    %cst_10 = arith.constant dense<0.000000e+00> : vector<32xf32>
    %26 = vector.multi_reduction <add>, %25, %cst_10 [0] : vector<16x32xf32> to vector<32xf32>
    %27 = vector.shape_cast %26 : vector<32xf32> to vector<1x32xf32>
    %cst_11 = arith.constant 1.600000e+01 : f32
    %28 = vector.broadcast %cst_11 : f32 to vector<1x32xf32>
    %29 = arith.divf %27, %28 : vector<1x32xf32>
    %30 = arith.truncf %29 : vector<1x32xf32> to vector<1x32xbf16>
    %c0_12 = arith.constant 0 : index
    %c0_13 = arith.constant 0 : index
    %31 = vector.load %arg4[%c0_12, %c0_13] : memref<32x10xbf16, #tpu.memory_space<vmem>>, vector<32x10xbf16>
    %cst_14 = arith.constant dense<0.000000e+00> : vector<1x10xf32>
    %32 = tpu.matmul %30, %31, %cst_14 {dimension_numbers = #tpu.dot_dimension_numbers<[1], [0], [0], [1], [0, 0, 1, 1], [], []>} : vector<1x32xbf16>, vector<32x10xbf16>, vector<1x10xf32> -> vector<1x10xf32>
    %c0_15 = arith.constant 0 : index
    %c0_16 = arith.constant 0 : index
    %33 = vector.load %arg5[%c0_15, %c0_16] : memref<1x10xf32, #tpu.memory_space<vmem>>, vector<1x10xf32>
    %34 = arith.addf %32, %33 : vector<1x10xf32>
    %c0_17 = arith.constant 0 : index
    %c0_18 = arith.constant 0 : index
    %c0_19 = arith.constant 0 : index
    %35 = vector.load %arg6[%c0_17, %c0_18, %c0_19] : memref<1x1x10xf32, #tpu.memory_space<vmem>>, vector<1x1x10xf32>
    %36 = vector.shape_cast %35 : vector<1x1x10xf32> to vector<1x10xf32>
    %37 = vector.shape_cast %34 : vector<1x10xf32> to vector<1x1x10xf32>
    tpu.vector_store %arg6[%c0_17, %c0_18, %c0_19], %37 {strides = array<i32>} : memref<1x1x10xf32, #tpu.memory_space<vmem>>, vector<1x1x10xf32>,
    return
  }
  func.func @transform_0(%arg0: i32) -> (i32, i32, i32) {
    %c0_i32 = arith.constant 0 : i32
    %c0_i32_0 = arith.constant 0 : i32
    %c0_i32_1 = arith.constant 0 : i32
    return %arg0, %c0_i32, %c0_i32_0 : i32, i32, i32
  }
  func.func @transform_1(%arg0: i32) -> (i32, i32) {
    %c0_i32 = arith.constant 0 : i32
    %c0_i32_0 = arith.constant 0 : i32
    %c0_i32_1 = arith.constant 0 : i32
    return %c0_i32, %c0_i32_0 : i32, i32
  }
  func.func @transform_2(%arg0: i32) -> (i32, i32) {
    %c0_i32 = arith.constant 0 : i32
    %c0_i32_0 = arith.constant 0 : i32
    %c0_i32_1 = arith.constant 0 : i32
    return %c0_i32, %c0_i32_0 : i32, i32
  }
  func.func @transform_3(%arg0: i32) -> (i32, i32) {
    %c0_i32 = arith.constant 0 : i32
    %c0_i32_0 = arith.constant 0 : i32
    %c0_i32_1 = arith.constant 0 : i32
    return %c0_i32, %c0_i32_0 : i32, i32
  }
  func.func @transform_4(%arg0: i32) -> (i32, i32) {
    %c0_i32 = arith.constant 0 : i32
    %c0_i32_0 = arith.constant 0 : i32
    %c0_i32_1 = arith.constant 0 : i32
    return %c0_i32, %c0_i32_0 : i32, i32
  }
  func.func @transform_5(%arg0: i32) -> (i32, i32, i32) {
    %c0_i32 = arith.constant 0 : i32
    %c0_i32_0 = arith.constant 0 : i32
    %c0_i32_1 = arith.constant 0 : i32
    return %arg0, %c0_i32, %c0_i32_0 : i32, i32, i32
  }
}

module attributes {stable_mosaic.version = 11 : i64} {
  func.func @_transformer_block_kernel(%arg0: i32, %arg1: memref<1x16x32xf32, #tpu.memory_space<vmem>>, %arg2: memref<1x32xf32, #tpu.memory_space<vmem>>, %arg3: memref<1x32xf32, #tpu.memory_space<vmem>>, %arg4: memref<4x32x8xbf16, #tpu.memory_space<vmem>>, %arg5: memref<4x32x8xbf16, #tpu.memory_space<vmem>>, %arg6: memref<4x32x8xbf16, #tpu.memory_space<vmem>>, %arg7: memref<4x1x8xf32, #tpu.memory_space<vmem>>, %arg8: memref<4x1x8xf32, #tpu.memory_space<vmem>>, %arg9: memref<4x1x8xf32, #tpu.memory_space<vmem>>, %arg10: memref<4x8x32xbf16, #tpu.memory_space<vmem>>, %arg11: memref<1x32xf32, #tpu.memory_space<vmem>>, %arg12: memref<1x32xf32, #tpu.memory_space<vmem>>, %arg13: memref<1x32xf32, #tpu.memory_space<vmem>>, %arg14: memref<32x64xbf16, #tpu.memory_space<vmem>>, %arg15: memref<1x64xf32, #tpu.memory_space<vmem>>, %arg16: memref<64x32xbf16, #tpu.memory_space<vmem>>, %arg17: memref<1x32xf32, #tpu.memory_space<vmem>>, %arg18: memref<1x16x32xf32, #tpu.memory_space<vmem>>) attributes {dimension_semantics = [#tpu.dimension_semantics<parallel>], iteration_bounds = array<i64: 2>, scalar_prefetch = 0 : i64, scratch_operands = 0 : i64, tpu.core_type = #tpu.core_type<tc>, window_params = [{transform_indices = @transform_0, window_bounds = array<i64: 1, 16, 32>}, {pipeline_mode = #tpu.pipeline_mode<synchronous>, transform_indices = @transform_1, window_bounds = array<i64: 1, 32>}, {pipeline_mode = #tpu.pipeline_mode<synchronous>, transform_indices = @transform_2, window_bounds = array<i64: 1, 32>}, {pipeline_mode = #tpu.pipeline_mode<synchronous>, transform_indices = @transform_3, window_bounds = array<i64: 4, 32, 8>}, {pipeline_mode = #tpu.pipeline_mode<synchronous>, transform_indices = @transform_4, window_bounds = array<i64: 4, 32, 8>}, {pipeline_mode = #tpu.pipeline_mode<synchronous>, transform_indices = @transform_5, window_bounds = array<i64: 4, 32, 8>}, {pipeline_mode = #tpu.pipeline_mode<synchronous>, transform_indices = @transform_6, window_bounds = array<i64: 4, 1, 8>}, {pipeline_mode = #tpu.pipeline_mode<synchronous>, transform_indices = @transform_7, window_bounds = array<i64: 4, 1, 8>}, {pipeline_mode = #tpu.pipeline_mode<synchronous>, transform_indices = @transform_8, window_bounds = array<i64: 4, 1, 8>}, {pipeline_mode = #tpu.pipeline_mode<synchronous>, transform_indices = @transform_9, window_bounds = array<i64: 4, 8, 32>}, {pipeline_mode = #tpu.pipeline_mode<synchronous>, transform_indices = @transform_10, window_bounds = array<i64: 1, 32>}, {pipeline_mode = #tpu.pipeline_mode<synchronous>, transform_indices = @transform_11, window_bounds = array<i64: 1, 32>}, {pipeline_mode = #tpu.pipeline_mode<synchronous>, transform_indices = @transform_12, window_bounds = array<i64: 1, 32>}, {pipeline_mode = #tpu.pipeline_mode<synchronous>, transform_indices = @transform_13, window_bounds = array<i64: 32, 64>}, {pipeline_mode = #tpu.pipeline_mode<synchronous>, transform_indices = @transform_14, window_bounds = array<i64: 1, 64>}, {pipeline_mode = #tpu.pipeline_mode<synchronous>, transform_indices = @transform_15, window_bounds = array<i64: 64, 32>}, {pipeline_mode = #tpu.pipeline_mode<synchronous>, transform_indices = @transform_16, window_bounds = array<i64: 1, 32>}, {transform_indices = @transform_17, window_bounds = array<i64: 1, 16, 32>}]} {
    %c0 = arith.constant 0 : index
    %c0_0 = arith.constant 0 : index
    %c0_1 = arith.constant 0 : index
    %0 = vector.load %arg1[%c0, %c0_0, %c0_1] : memref<1x16x32xf32, #tpu.memory_space<vmem>>, vector<1x16x32xf32>
    %1 = vector.shape_cast %0 : vector<1x16x32xf32> to vector<16x32xf32>
    %c0_2 = arith.constant 0 : index
    %c0_3 = arith.constant 0 : index
    %2 = vector.load %arg2[%c0_2, %c0_3] : memref<1x32xf32, #tpu.memory_space<vmem>>, vector<1x32xf32>
    %c0_4 = arith.constant 0 : index
    %c0_5 = arith.constant 0 : index
    %3 = vector.load %arg3[%c0_4, %c0_5] : memref<1x32xf32, #tpu.memory_space<vmem>>, vector<1x32xf32>
    %cst = arith.constant dense<0.000000e+00> : vector<16xf32>
    %4 = vector.multi_reduction <add>, %1, %cst [1] : vector<16x32xf32> to vector<16xf32>
    %5 = vector.shape_cast %4 : vector<16xf32> to vector<16x1xf32>
    %cst_6 = arith.constant 3.200000e+01 : f32
    %6 = vector.broadcast %cst_6 : f32 to vector<16x1xf32>
    %7 = arith.divf %5, %6 : vector<16x1xf32>
    %8 = vector.broadcast %7 : vector<16x1xf32> to vector<16x32xf32>
    %9 = arith.subf %1, %8 : vector<16x32xf32>
    %10 = arith.mulf %9, %9 : vector<16x32xf32>
    %cst_7 = arith.constant dense<0.000000e+00> : vector<16xf32>
    %11 = vector.multi_reduction <add>, %10, %cst_7 [1] : vector<16x32xf32> to vector<16xf32>
    %12 = vector.shape_cast %11 : vector<16xf32> to vector<16x1xf32>
    %cst_8 = arith.constant 3.200000e+01 : f32
    %13 = vector.broadcast %cst_8 : f32 to vector<16x1xf32>
    %14 = arith.divf %12, %13 : vector<16x1xf32>
    %15 = vector.broadcast %7 : vector<16x1xf32> to vector<16x32xf32>
    %16 = arith.subf %1, %15 : vector<16x32xf32>
    %cst_9 = arith.constant 9.99999997E-7 : f32
    %17 = vector.broadcast %cst_9 : f32 to vector<16x1xf32>
    %18 = arith.addf %14, %17 : vector<16x1xf32>
    %19 = math.rsqrt %18 : vector<16x1xf32>
    %20 = vector.broadcast %19 : vector<16x1xf32> to vector<16x32xf32>
    %21 = arith.mulf %16, %20 : vector<16x32xf32>
    %22 = vector.broadcast %2 : vector<1x32xf32> to vector<16x32xf32>
    %23 = arith.mulf %21, %22 : vector<16x32xf32>
    %24 = vector.broadcast %3 : vector<1x32xf32> to vector<16x32xf32>
    %25 = arith.addf %23, %24 : vector<16x32xf32>
    %26 = arith.truncf %25 : vector<16x32xf32> to vector<16x32xbf16>
    %cst_10 = arith.constant 0.000000e+00 : f32
    %27 = vector.broadcast %cst_10 : f32 to vector<16x32xf32>
    %c0_11 = arith.constant 0 : index
    %c0_12 = arith.constant 0 : index
    %c0_13 = arith.constant 0 : index
    %28 = vector.load %arg4[%c0_11, %c0_12, %c0_13] : memref<4x32x8xbf16, #tpu.memory_space<vmem>>, vector<1x32x8xbf16>
    %29 = vector.shape_cast %28 : vector<1x32x8xbf16> to vector<32x8xbf16>
    %cst_14 = arith.constant dense<0.000000e+00> : vector<16x8xf32>
    %30 = tpu.matmul %26, %29, %cst_14 {dimension_numbers = #tpu.dot_dimension_numbers<[1], [0], [0], [1], [0, 0, 1, 1], [], []>} : vector<16x32xbf16>, vector<32x8xbf16>, vector<16x8xf32> -> vector<16x8xf32>
    %c0_15 = arith.constant 0 : index
    %c0_16 = arith.constant 0 : index
    %c0_17 = arith.constant 0 : index
    %31 = vector.load %arg7[%c0_15, %c0_16, %c0_17] : memref<4x1x8xf32, #tpu.memory_space<vmem>>, vector<1x1x8xf32>
    %32 = vector.shape_cast %31 : vector<1x1x8xf32> to vector<1x8xf32>
    %33 = vector.broadcast %32 : vector<1x8xf32> to vector<16x8xf32>
    %34 = arith.addf %30, %33 : vector<16x8xf32>
    %cst_18 = arith.constant 0.353553385 : f32
    %35 = vector.broadcast %cst_18 : f32 to vector<16x8xf32>
    %36 = arith.mulf %34, %35 : vector<16x8xf32>
    %c0_19 = arith.constant 0 : index
    %c0_20 = arith.constant 0 : index
    %c0_21 = arith.constant 0 : index
    %37 = vector.load %arg5[%c0_19, %c0_20, %c0_21] : memref<4x32x8xbf16, #tpu.memory_space<vmem>>, vector<1x32x8xbf16>
    %38 = vector.shape_cast %37 : vector<1x32x8xbf16> to vector<32x8xbf16>
    %cst_22 = arith.constant dense<0.000000e+00> : vector<16x8xf32>
    %39 = tpu.matmul %26, %38, %cst_22 {dimension_numbers = #tpu.dot_dimension_numbers<[1], [0], [0], [1], [0, 0, 1, 1], [], []>} : vector<16x32xbf16>, vector<32x8xbf16>, vector<16x8xf32> -> vector<16x8xf32>
    %c0_23 = arith.constant 0 : index
    %c0_24 = arith.constant 0 : index
    %c0_25 = arith.constant 0 : index
    %40 = vector.load %arg8[%c0_23, %c0_24, %c0_25] : memref<4x1x8xf32, #tpu.memory_space<vmem>>, vector<1x1x8xf32>
    %41 = vector.shape_cast %40 : vector<1x1x8xf32> to vector<1x8xf32>
    %42 = vector.broadcast %41 : vector<1x8xf32> to vector<16x8xf32>
    %43 = arith.addf %39, %42 : vector<16x8xf32>
    %c0_26 = arith.constant 0 : index
    %c0_27 = arith.constant 0 : index
    %c0_28 = arith.constant 0 : index
    %44 = vector.load %arg6[%c0_26, %c0_27, %c0_28] : memref<4x32x8xbf16, #tpu.memory_space<vmem>>, vector<1x32x8xbf16>
    %45 = vector.shape_cast %44 : vector<1x32x8xbf16> to vector<32x8xbf16>
    %cst_29 = arith.constant dense<0.000000e+00> : vector<16x8xf32>
    %46 = tpu.matmul %26, %45, %cst_29 {dimension_numbers = #tpu.dot_dimension_numbers<[1], [0], [0], [1], [0, 0, 1, 1], [], []>} : vector<16x32xbf16>, vector<32x8xbf16>, vector<16x8xf32> -> vector<16x8xf32>
    %c0_30 = arith.constant 0 : index
    %c0_31 = arith.constant 0 : index
    %c0_32 = arith.constant 0 : index
    %47 = vector.load %arg9[%c0_30, %c0_31, %c0_32] : memref<4x1x8xf32, #tpu.memory_space<vmem>>, vector<1x1x8xf32>
    %48 = vector.shape_cast %47 : vector<1x1x8xf32> to vector<1x8xf32>
    %49 = vector.broadcast %48 : vector<1x8xf32> to vector<16x8xf32>
    %50 = arith.addf %46, %49 : vector<16x8xf32>
    %cst_33 = arith.constant dense<0.000000e+00> : vector<16x16xf32>
    %51 = tpu.matmul %36, %43, %cst_33 {dimension_numbers = #tpu.dot_dimension_numbers<[1], [1], [0], [0], [0, 0, 1, 0], [], []>} : vector<16x8xf32>, vector<16x8xf32>, vector<16x16xf32> -> vector<16x16xf32>
    %cst_34 = arith.constant dense<0xFF800000> : vector<16xf32>
    %52 = vector.multi_reduction <maximumf>, %51, %cst_34 [1] : vector<16x16xf32> to vector<16xf32>
    %53 = vector.shape_cast %52 : vector<16xf32> to vector<16x1xf32>
    %54 = vector.broadcast %53 : vector<16x1xf32> to vector<16x16xf32>
    %55 = arith.subf %51, %54 : vector<16x16xf32>
    %56 = math.exp %55 : vector<16x16xf32>
    %cst_35 = arith.constant dense<0.000000e+00> : vector<16xf32>
    %57 = vector.multi_reduction <add>, %56, %cst_35 [1] : vector<16x16xf32> to vector<16xf32>
    %58 = vector.shape_cast %57 : vector<16xf32> to vector<16x1xf32>
    %59 = tpu.reciprocal %58 {approx = true} : vector<16x1xf32> -> vector<16x1xf32>
    %60 = vector.broadcast %59 : vector<16x1xf32> to vector<16x16xf32>
    %61 = arith.mulf %56, %60 : vector<16x16xf32>
    %cst_36 = arith.constant dense<0.000000e+00> : vector<16x8xf32>
    %62 = tpu.matmul %61, %50, %cst_36 {dimension_numbers = #tpu.dot_dimension_numbers<[1], [0], [0], [1], [0, 0, 1, 1], [], []>} : vector<16x16xf32>, vector<16x8xf32>, vector<16x8xf32> -> vector<16x8xf32>
    %63 = arith.truncf %62 : vector<16x8xf32> to vector<16x8xbf16>
    %c0_37 = arith.constant 0 : index
    %c0_38 = arith.constant 0 : index
    %c0_39 = arith.constant 0 : index
    %64 = vector.load %arg10[%c0_37, %c0_38, %c0_39] : memref<4x8x32xbf16, #tpu.memory_space<vmem>>, vector<1x8x32xbf16>
    %65 = vector.shape_cast %64 : vector<1x8x32xbf16> to vector<8x32xbf16>
    %cst_40 = arith.constant dense<0.000000e+00> : vector<16x32xf32>
    %66 = tpu.matmul %63, %65, %cst_40 {dimension_numbers = #tpu.dot_dimension_numbers<[1], [0], [0], [1], [0, 0, 1, 1], [], []>} : vector<16x8xbf16>, vector<8x32xbf16>, vector<16x32xf32> -> vector<16x32xf32>
    %67 = arith.addf %27, %66 : vector<16x32xf32>
    %c1 = arith.constant 1 : index
    %c0_41 = arith.constant 0 : index
    %c0_42 = arith.constant 0 : index
    %68 = vector.load %arg4[%c1, %c0_41, %c0_42] : memref<4x32x8xbf16, #tpu.memory_space<vmem>>, vector<1x32x8xbf16>
    %69 = vector.shape_cast %68 : vector<1x32x8xbf16> to vector<32x8xbf16>
    %cst_43 = arith.constant dense<0.000000e+00> : vector<16x8xf32>
    %70 = tpu.matmul %26, %69, %cst_43 {dimension_numbers = #tpu.dot_dimension_numbers<[1], [0], [0], [1], [0, 0, 1, 1], [], []>} : vector<16x32xbf16>, vector<32x8xbf16>, vector<16x8xf32> -> vector<16x8xf32>
    %c1_44 = arith.constant 1 : index
    %c0_45 = arith.constant 0 : index
    %c0_46 = arith.constant 0 : index
    %71 = vector.load %arg7[%c1_44, %c0_45, %c0_46] : memref<4x1x8xf32, #tpu.memory_space<vmem>>, vector<1x1x8xf32>
    %72 = vector.shape_cast %71 : vector<1x1x8xf32> to vector<1x8xf32>
    %73 = vector.broadcast %72 : vector<1x8xf32> to vector<16x8xf32>
    %74 = arith.addf %70, %73 : vector<16x8xf32>
    %cst_47 = arith.constant 0.353553385 : f32
    %75 = vector.broadcast %cst_47 : f32 to vector<16x8xf32>
    %76 = arith.mulf %74, %75 : vector<16x8xf32>
    %c1_48 = arith.constant 1 : index
    %c0_49 = arith.constant 0 : index
    %c0_50 = arith.constant 0 : index
    %77 = vector.load %arg5[%c1_48, %c0_49, %c0_50] : memref<4x32x8xbf16, #tpu.memory_space<vmem>>, vector<1x32x8xbf16>
    %78 = vector.shape_cast %77 : vector<1x32x8xbf16> to vector<32x8xbf16>
    %cst_51 = arith.constant dense<0.000000e+00> : vector<16x8xf32>
    %79 = tpu.matmul %26, %78, %cst_51 {dimension_numbers = #tpu.dot_dimension_numbers<[1], [0], [0], [1], [0, 0, 1, 1], [], []>} : vector<16x32xbf16>, vector<32x8xbf16>, vector<16x8xf32> -> vector<16x8xf32>
    %c1_52 = arith.constant 1 : index
    %c0_53 = arith.constant 0 : index
    %c0_54 = arith.constant 0 : index
    %80 = vector.load %arg8[%c1_52, %c0_53, %c0_54] : memref<4x1x8xf32, #tpu.memory_space<vmem>>, vector<1x1x8xf32>
    %81 = vector.shape_cast %80 : vector<1x1x8xf32> to vector<1x8xf32>
    %82 = vector.broadcast %81 : vector<1x8xf32> to vector<16x8xf32>
    %83 = arith.addf %79, %82 : vector<16x8xf32>
    %c1_55 = arith.constant 1 : index
    %c0_56 = arith.constant 0 : index
    %c0_57 = arith.constant 0 : index
    %84 = vector.load %arg6[%c1_55, %c0_56, %c0_57] : memref<4x32x8xbf16, #tpu.memory_space<vmem>>, vector<1x32x8xbf16>
    %85 = vector.shape_cast %84 : vector<1x32x8xbf16> to vector<32x8xbf16>
    %cst_58 = arith.constant dense<0.000000e+00> : vector<16x8xf32>
    %86 = tpu.matmul %26, %85, %cst_58 {dimension_numbers = #tpu.dot_dimension_numbers<[1], [0], [0], [1], [0, 0, 1, 1], [], []>} : vector<16x32xbf16>, vector<32x8xbf16>, vector<16x8xf32> -> vector<16x8xf32>
    %c1_59 = arith.constant 1 : index
    %c0_60 = arith.constant 0 : index
    %c0_61 = arith.constant 0 : index
    %87 = vector.load %arg9[%c1_59, %c0_60, %c0_61] : memref<4x1x8xf32, #tpu.memory_space<vmem>>, vector<1x1x8xf32>
    %88 = vector.shape_cast %87 : vector<1x1x8xf32> to vector<1x8xf32>
    %89 = vector.broadcast %88 : vector<1x8xf32> to vector<16x8xf32>
    %90 = arith.addf %86, %89 : vector<16x8xf32>
    %cst_62 = arith.constant dense<0.000000e+00> : vector<16x16xf32>
    %91 = tpu.matmul %76, %83, %cst_62 {dimension_numbers = #tpu.dot_dimension_numbers<[1], [1], [0], [0], [0, 0, 1, 0], [], []>} : vector<16x8xf32>, vector<16x8xf32>, vector<16x16xf32> -> vector<16x16xf32>
    %cst_63 = arith.constant dense<0xFF800000> : vector<16xf32>
    %92 = vector.multi_reduction <maximumf>, %91, %cst_63 [1] : vector<16x16xf32> to vector<16xf32>
    %93 = vector.shape_cast %92 : vector<16xf32> to vector<16x1xf32>
    %94 = vector.broadcast %93 : vector<16x1xf32> to vector<16x16xf32>
    %95 = arith.subf %91, %94 : vector<16x16xf32>
    %96 = math.exp %95 : vector<16x16xf32>
    %cst_64 = arith.constant dense<0.000000e+00> : vector<16xf32>
    %97 = vector.multi_reduction <add>, %96, %cst_64 [1] : vector<16x16xf32> to vector<16xf32>
    %98 = vector.shape_cast %97 : vector<16xf32> to vector<16x1xf32>
    %99 = tpu.reciprocal %98 {approx = true} : vector<16x1xf32> -> vector<16x1xf32>
    %100 = vector.broadcast %99 : vector<16x1xf32> to vector<16x16xf32>
    %101 = arith.mulf %96, %100 : vector<16x16xf32>
    %cst_65 = arith.constant dense<0.000000e+00> : vector<16x8xf32>
    %102 = tpu.matmul %101, %90, %cst_65 {dimension_numbers = #tpu.dot_dimension_numbers<[1], [0], [0], [1], [0, 0, 1, 1], [], []>} : vector<16x16xf32>, vector<16x8xf32>, vector<16x8xf32> -> vector<16x8xf32>
    %103 = arith.truncf %102 : vector<16x8xf32> to vector<16x8xbf16>
    %c1_66 = arith.constant 1 : index
    %c0_67 = arith.constant 0 : index
    %c0_68 = arith.constant 0 : index
    %104 = vector.load %arg10[%c1_66, %c0_67, %c0_68] : memref<4x8x32xbf16, #tpu.memory_space<vmem>>, vector<1x8x32xbf16>
    %105 = vector.shape_cast %104 : vector<1x8x32xbf16> to vector<8x32xbf16>
    %cst_69 = arith.constant dense<0.000000e+00> : vector<16x32xf32>
    %106 = tpu.matmul %103, %105, %cst_69 {dimension_numbers = #tpu.dot_dimension_numbers<[1], [0], [0], [1], [0, 0, 1, 1], [], []>} : vector<16x8xbf16>, vector<8x32xbf16>, vector<16x32xf32> -> vector<16x32xf32>
    %107 = arith.addf %67, %106 : vector<16x32xf32>
    %c2 = arith.constant 2 : index
    %c0_70 = arith.constant 0 : index
    %c0_71 = arith.constant 0 : index
    %108 = vector.load %arg4[%c2, %c0_70, %c0_71] : memref<4x32x8xbf16, #tpu.memory_space<vmem>>, vector<1x32x8xbf16>
    %109 = vector.shape_cast %108 : vector<1x32x8xbf16> to vector<32x8xbf16>
    %cst_72 = arith.constant dense<0.000000e+00> : vector<16x8xf32>
    %110 = tpu.matmul %26, %109, %cst_72 {dimension_numbers = #tpu.dot_dimension_numbers<[1], [0], [0], [1], [0, 0, 1, 1], [], []>} : vector<16x32xbf16>, vector<32x8xbf16>, vector<16x8xf32> -> vector<16x8xf32>
    %c2_73 = arith.constant 2 : index
    %c0_74 = arith.constant 0 : index
    %c0_75 = arith.constant 0 : index
    %111 = vector.load %arg7[%c2_73, %c0_74, %c0_75] : memref<4x1x8xf32, #tpu.memory_space<vmem>>, vector<1x1x8xf32>
    %112 = vector.shape_cast %111 : vector<1x1x8xf32> to vector<1x8xf32>
    %113 = vector.broadcast %112 : vector<1x8xf32> to vector<16x8xf32>
    %114 = arith.addf %110, %113 : vector<16x8xf32>
    %cst_76 = arith.constant 0.353553385 : f32
    %115 = vector.broadcast %cst_76 : f32 to vector<16x8xf32>
    %116 = arith.mulf %114, %115 : vector<16x8xf32>
    %c2_77 = arith.constant 2 : index
    %c0_78 = arith.constant 0 : index
    %c0_79 = arith.constant 0 : index
    %117 = vector.load %arg5[%c2_77, %c0_78, %c0_79] : memref<4x32x8xbf16, #tpu.memory_space<vmem>>, vector<1x32x8xbf16>
    %118 = vector.shape_cast %117 : vector<1x32x8xbf16> to vector<32x8xbf16>
    %cst_80 = arith.constant dense<0.000000e+00> : vector<16x8xf32>
    %119 = tpu.matmul %26, %118, %cst_80 {dimension_numbers = #tpu.dot_dimension_numbers<[1], [0], [0], [1], [0, 0, 1, 1], [], []>} : vector<16x32xbf16>, vector<32x8xbf16>, vector<16x8xf32> -> vector<16x8xf32>
    %c2_81 = arith.constant 2 : index
    %c0_82 = arith.constant 0 : index
    %c0_83 = arith.constant 0 : index
    %120 = vector.load %arg8[%c2_81, %c0_82, %c0_83] : memref<4x1x8xf32, #tpu.memory_space<vmem>>, vector<1x1x8xf32>
    %121 = vector.shape_cast %120 : vector<1x1x8xf32> to vector<1x8xf32>
    %122 = vector.broadcast %121 : vector<1x8xf32> to vector<16x8xf32>
    %123 = arith.addf %119, %122 : vector<16x8xf32>
    %c2_84 = arith.constant 2 : index
    %c0_85 = arith.constant 0 : index
    %c0_86 = arith.constant 0 : index
    %124 = vector.load %arg6[%c2_84, %c0_85, %c0_86] : memref<4x32x8xbf16, #tpu.memory_space<vmem>>, vector<1x32x8xbf16>
    %125 = vector.shape_cast %124 : vector<1x32x8xbf16> to vector<32x8xbf16>
    %cst_87 = arith.constant dense<0.000000e+00> : vector<16x8xf32>
    %126 = tpu.matmul %26, %125, %cst_87 {dimension_numbers = #tpu.dot_dimension_numbers<[1], [0], [0], [1], [0, 0, 1, 1], [], []>} : vector<16x32xbf16>, vector<32x8xbf16>, vector<16x8xf32> -> vector<16x8xf32>
    %c2_88 = arith.constant 2 : index
    %c0_89 = arith.constant 0 : index
    %c0_90 = arith.constant 0 : index
    %127 = vector.load %arg9[%c2_88, %c0_89, %c0_90] : memref<4x1x8xf32, #tpu.memory_space<vmem>>, vector<1x1x8xf32>
    %128 = vector.shape_cast %127 : vector<1x1x8xf32> to vector<1x8xf32>
    %129 = vector.broadcast %128 : vector<1x8xf32> to vector<16x8xf32>
    %130 = arith.addf %126, %129 : vector<16x8xf32>
    %cst_91 = arith.constant dense<0.000000e+00> : vector<16x16xf32>
    %131 = tpu.matmul %116, %123, %cst_91 {dimension_numbers = #tpu.dot_dimension_numbers<[1], [1], [0], [0], [0, 0, 1, 0], [], []>} : vector<16x8xf32>, vector<16x8xf32>, vector<16x16xf32> -> vector<16x16xf32>
    %cst_92 = arith.constant dense<0xFF800000> : vector<16xf32>
    %132 = vector.multi_reduction <maximumf>, %131, %cst_92 [1] : vector<16x16xf32> to vector<16xf32>
    %133 = vector.shape_cast %132 : vector<16xf32> to vector<16x1xf32>
    %134 = vector.broadcast %133 : vector<16x1xf32> to vector<16x16xf32>
    %135 = arith.subf %131, %134 : vector<16x16xf32>
    %136 = math.exp %135 : vector<16x16xf32>
    %cst_93 = arith.constant dense<0.000000e+00> : vector<16xf32>
    %137 = vector.multi_reduction <add>, %136, %cst_93 [1] : vector<16x16xf32> to vector<16xf32>
    %138 = vector.shape_cast %137 : vector<16xf32> to vector<16x1xf32>
    %139 = tpu.reciprocal %138 {approx = true} : vector<16x1xf32> -> vector<16x1xf32>
    %140 = vector.broadcast %139 : vector<16x1xf32> to vector<16x16xf32>
    %141 = arith.mulf %136, %140 : vector<16x16xf32>
    %cst_94 = arith.constant dense<0.000000e+00> : vector<16x8xf32>
    %142 = tpu.matmul %141, %130, %cst_94 {dimension_numbers = #tpu.dot_dimension_numbers<[1], [0], [0], [1], [0, 0, 1, 1], [], []>} : vector<16x16xf32>, vector<16x8xf32>, vector<16x8xf32> -> vector<16x8xf32>
    %143 = arith.truncf %142 : vector<16x8xf32> to vector<16x8xbf16>
    %c2_95 = arith.constant 2 : index
    %c0_96 = arith.constant 0 : index
    %c0_97 = arith.constant 0 : index
    %144 = vector.load %arg10[%c2_95, %c0_96, %c0_97] : memref<4x8x32xbf16, #tpu.memory_space<vmem>>, vector<1x8x32xbf16>
    %145 = vector.shape_cast %144 : vector<1x8x32xbf16> to vector<8x32xbf16>
    %cst_98 = arith.constant dense<0.000000e+00> : vector<16x32xf32>
    %146 = tpu.matmul %143, %145, %cst_98 {dimension_numbers = #tpu.dot_dimension_numbers<[1], [0], [0], [1], [0, 0, 1, 1], [], []>} : vector<16x8xbf16>, vector<8x32xbf16>, vector<16x32xf32> -> vector<16x32xf32>
    %147 = arith.addf %107, %146 : vector<16x32xf32>
    %c3 = arith.constant 3 : index
    %c0_99 = arith.constant 0 : index
    %c0_100 = arith.constant 0 : index
    %148 = vector.load %arg4[%c3, %c0_99, %c0_100] : memref<4x32x8xbf16, #tpu.memory_space<vmem>>, vector<1x32x8xbf16>
    %149 = vector.shape_cast %148 : vector<1x32x8xbf16> to vector<32x8xbf16>
    %cst_101 = arith.constant dense<0.000000e+00> : vector<16x8xf32>
    %150 = tpu.matmul %26, %149, %cst_101 {dimension_numbers = #tpu.dot_dimension_numbers<[1], [0], [0], [1], [0, 0, 1, 1], [], []>} : vector<16x32xbf16>, vector<32x8xbf16>, vector<16x8xf32> -> vector<16x8xf32>
    %c3_102 = arith.constant 3 : index
    %c0_103 = arith.constant 0 : index
    %c0_104 = arith.constant 0 : index
    %151 = vector.load %arg7[%c3_102, %c0_103, %c0_104] : memref<4x1x8xf32, #tpu.memory_space<vmem>>, vector<1x1x8xf32>
    %152 = vector.shape_cast %151 : vector<1x1x8xf32> to vector<1x8xf32>
    %153 = vector.broadcast %152 : vector<1x8xf32> to vector<16x8xf32>
    %154 = arith.addf %150, %153 : vector<16x8xf32>
    %cst_105 = arith.constant 0.353553385 : f32
    %155 = vector.broadcast %cst_105 : f32 to vector<16x8xf32>
    %156 = arith.mulf %154, %155 : vector<16x8xf32>
    %c3_106 = arith.constant 3 : index
    %c0_107 = arith.constant 0 : index
    %c0_108 = arith.constant 0 : index
    %157 = vector.load %arg5[%c3_106, %c0_107, %c0_108] : memref<4x32x8xbf16, #tpu.memory_space<vmem>>, vector<1x32x8xbf16>
    %158 = vector.shape_cast %157 : vector<1x32x8xbf16> to vector<32x8xbf16>
    %cst_109 = arith.constant dense<0.000000e+00> : vector<16x8xf32>
    %159 = tpu.matmul %26, %158, %cst_109 {dimension_numbers = #tpu.dot_dimension_numbers<[1], [0], [0], [1], [0, 0, 1, 1], [], []>} : vector<16x32xbf16>, vector<32x8xbf16>, vector<16x8xf32> -> vector<16x8xf32>
    %c3_110 = arith.constant 3 : index
    %c0_111 = arith.constant 0 : index
    %c0_112 = arith.constant 0 : index
    %160 = vector.load %arg8[%c3_110, %c0_111, %c0_112] : memref<4x1x8xf32, #tpu.memory_space<vmem>>, vector<1x1x8xf32>
    %161 = vector.shape_cast %160 : vector<1x1x8xf32> to vector<1x8xf32>
    %162 = vector.broadcast %161 : vector<1x8xf32> to vector<16x8xf32>
    %163 = arith.addf %159, %162 : vector<16x8xf32>
    %c3_113 = arith.constant 3 : index
    %c0_114 = arith.constant 0 : index
    %c0_115 = arith.constant 0 : index
    %164 = vector.load %arg6[%c3_113, %c0_114, %c0_115] : memref<4x32x8xbf16, #tpu.memory_space<vmem>>, vector<1x32x8xbf16>
    %165 = vector.shape_cast %164 : vector<1x32x8xbf16> to vector<32x8xbf16>
    %cst_116 = arith.constant dense<0.000000e+00> : vector<16x8xf32>
    %166 = tpu.matmul %26, %165, %cst_116 {dimension_numbers = #tpu.dot_dimension_numbers<[1], [0], [0], [1], [0, 0, 1, 1], [], []>} : vector<16x32xbf16>, vector<32x8xbf16>, vector<16x8xf32> -> vector<16x8xf32>
    %c3_117 = arith.constant 3 : index
    %c0_118 = arith.constant 0 : index
    %c0_119 = arith.constant 0 : index
    %167 = vector.load %arg9[%c3_117, %c0_118, %c0_119] : memref<4x1x8xf32, #tpu.memory_space<vmem>>, vector<1x1x8xf32>
    %168 = vector.shape_cast %167 : vector<1x1x8xf32> to vector<1x8xf32>
    %169 = vector.broadcast %168 : vector<1x8xf32> to vector<16x8xf32>
    %170 = arith.addf %166, %169 : vector<16x8xf32>
    %cst_120 = arith.constant dense<0.000000e+00> : vector<16x16xf32>
    %171 = tpu.matmul %156, %163, %cst_120 {dimension_numbers = #tpu.dot_dimension_numbers<[1], [1], [0], [0], [0, 0, 1, 0], [], []>} : vector<16x8xf32>, vector<16x8xf32>, vector<16x16xf32> -> vector<16x16xf32>
    %cst_121 = arith.constant dense<0xFF800000> : vector<16xf32>
    %172 = vector.multi_reduction <maximumf>, %171, %cst_121 [1] : vector<16x16xf32> to vector<16xf32>
    %173 = vector.shape_cast %172 : vector<16xf32> to vector<16x1xf32>
    %174 = vector.broadcast %173 : vector<16x1xf32> to vector<16x16xf32>
    %175 = arith.subf %171, %174 : vector<16x16xf32>
    %176 = math.exp %175 : vector<16x16xf32>
    %cst_122 = arith.constant dense<0.000000e+00> : vector<16xf32>
    %177 = vector.multi_reduction <add>, %176, %cst_122 [1] : vector<16x16xf32> to vector<16xf32>
    %178 = vector.shape_cast %177 : vector<16xf32> to vector<16x1xf32>
    %179 = tpu.reciprocal %178 {approx = true} : vector<16x1xf32> -> vector<16x1xf32>
    %180 = vector.broadcast %179 : vector<16x1xf32> to vector<16x16xf32>
    %181 = arith.mulf %176, %180 : vector<16x16xf32>
    %cst_123 = arith.constant dense<0.000000e+00> : vector<16x8xf32>
    %182 = tpu.matmul %181, %170, %cst_123 {dimension_numbers = #tpu.dot_dimension_numbers<[1], [0], [0], [1], [0, 0, 1, 1], [], []>} : vector<16x16xf32>, vector<16x8xf32>, vector<16x8xf32> -> vector<16x8xf32>
    %183 = arith.truncf %182 : vector<16x8xf32> to vector<16x8xbf16>
    %c3_124 = arith.constant 3 : index
    %c0_125 = arith.constant 0 : index
    %c0_126 = arith.constant 0 : index
    %184 = vector.load %arg10[%c3_124, %c0_125, %c0_126] : memref<4x8x32xbf16, #tpu.memory_space<vmem>>, vector<1x8x32xbf16>
    %185 = vector.shape_cast %184 : vector<1x8x32xbf16> to vector<8x32xbf16>
    %cst_127 = arith.constant dense<0.000000e+00> : vector<16x32xf32>
    %186 = tpu.matmul %183, %185, %cst_127 {dimension_numbers = #tpu.dot_dimension_numbers<[1], [0], [0], [1], [0, 0, 1, 1], [], []>} : vector<16x8xbf16>, vector<8x32xbf16>, vector<16x32xf32> -> vector<16x32xf32>
    %187 = arith.addf %147, %186 : vector<16x32xf32>
    %188 = arith.addf %1, %187 : vector<16x32xf32>
    %c0_128 = arith.constant 0 : index
    %c0_129 = arith.constant 0 : index
    %189 = vector.load %arg11[%c0_128, %c0_129] : memref<1x32xf32, #tpu.memory_space<vmem>>, vector<1x32xf32>
    %190 = vector.broadcast %189 : vector<1x32xf32> to vector<16x32xf32>
    %191 = arith.addf %188, %190 : vector<16x32xf32>
    %c0_130 = arith.constant 0 : index
    %c0_131 = arith.constant 0 : index
    %192 = vector.load %arg12[%c0_130, %c0_131] : memref<1x32xf32, #tpu.memory_space<vmem>>, vector<1x32xf32>
    %c0_132 = arith.constant 0 : index
    %c0_133 = arith.constant 0 : index
    %193 = vector.load %arg13[%c0_132, %c0_133] : memref<1x32xf32, #tpu.memory_space<vmem>>, vector<1x32xf32>
    %cst_134 = arith.constant dense<0.000000e+00> : vector<16xf32>
    %194 = vector.multi_reduction <add>, %191, %cst_134 [1] : vector<16x32xf32> to vector<16xf32>
    %195 = vector.shape_cast %194 : vector<16xf32> to vector<16x1xf32>
    %cst_135 = arith.constant 3.200000e+01 : f32
    %196 = vector.broadcast %cst_135 : f32 to vector<16x1xf32>
    %197 = arith.divf %195, %196 : vector<16x1xf32>
    %198 = vector.broadcast %197 : vector<16x1xf32> to vector<16x32xf32>
    %199 = arith.subf %191, %198 : vector<16x32xf32>
    %200 = arith.mulf %199, %199 : vector<16x32xf32>
    %cst_136 = arith.constant dense<0.000000e+00> : vector<16xf32>
    %201 = vector.multi_reduction <add>, %200, %cst_136 [1] : vector<16x32xf32> to vector<16xf32>
    %202 = vector.shape_cast %201 : vector<16xf32> to vector<16x1xf32>
    %cst_137 = arith.constant 3.200000e+01 : f32
    %203 = vector.broadcast %cst_137 : f32 to vector<16x1xf32>
    %204 = arith.divf %202, %203 : vector<16x1xf32>
    %205 = vector.broadcast %197 : vector<16x1xf32> to vector<16x32xf32>
    %206 = arith.subf %191, %205 : vector<16x32xf32>
    %cst_138 = arith.constant 9.99999997E-7 : f32
    %207 = vector.broadcast %cst_138 : f32 to vector<16x1xf32>
    %208 = arith.addf %204, %207 : vector<16x1xf32>
    %209 = math.rsqrt %208 : vector<16x1xf32>
    %210 = vector.broadcast %209 : vector<16x1xf32> to vector<16x32xf32>
    %211 = arith.mulf %206, %210 : vector<16x32xf32>
    %212 = vector.broadcast %192 : vector<1x32xf32> to vector<16x32xf32>
    %213 = arith.mulf %211, %212 : vector<16x32xf32>
    %214 = vector.broadcast %193 : vector<1x32xf32> to vector<16x32xf32>
    %215 = arith.addf %213, %214 : vector<16x32xf32>
    %216 = arith.truncf %215 : vector<16x32xf32> to vector<16x32xbf16>
    %c0_139 = arith.constant 0 : index
    %c0_140 = arith.constant 0 : index
    %217 = vector.load %arg14[%c0_139, %c0_140] : memref<32x64xbf16, #tpu.memory_space<vmem>>, vector<32x64xbf16>
    %cst_141 = arith.constant dense<0.000000e+00> : vector<16x64xf32>
    %218 = tpu.matmul %216, %217, %cst_141 {dimension_numbers = #tpu.dot_dimension_numbers<[1], [0], [0], [1], [0, 0, 1, 1], [], []>} : vector<16x32xbf16>, vector<32x64xbf16>, vector<16x64xf32> -> vector<16x64xf32>
    %c0_142 = arith.constant 0 : index
    %c0_143 = arith.constant 0 : index
    %219 = vector.load %arg15[%c0_142, %c0_143] : memref<1x64xf32, #tpu.memory_space<vmem>>, vector<1x64xf32>
    %220 = vector.broadcast %219 : vector<1x64xf32> to vector<16x64xf32>
    %221 = arith.addf %218, %220 : vector<16x64xf32>
    %222 = arith.mulf %221, %221 : vector<16x64xf32>
    %223 = arith.mulf %221, %222 : vector<16x64xf32>
    %cst_144 = arith.constant 4.471500e-02 : f32
    %224 = vector.broadcast %cst_144 : f32 to vector<16x64xf32>
    %225 = arith.mulf %224, %223 : vector<16x64xf32>
    %226 = arith.addf %221, %225 : vector<16x64xf32>
    %cst_145 = arith.constant 0.797884583 : f32
    %227 = vector.broadcast %cst_145 : f32 to vector<16x64xf32>
    %228 = arith.mulf %227, %226 : vector<16x64xf32>
    %229 = math.tanh %228 : vector<16x64xf32>
    %cst_146 = arith.constant 1.000000e+00 : f32
    %230 = vector.broadcast %cst_146 : f32 to vector<16x64xf32>
    %231 = arith.addf %230, %229 : vector<16x64xf32>
    %cst_147 = arith.constant 5.000000e-01 : f32
    %232 = vector.broadcast %cst_147 : f32 to vector<16x64xf32>
    %233 = arith.mulf %232, %231 : vector<16x64xf32>
    %234 = arith.mulf %221, %233 : vector<16x64xf32>
    %235 = arith.truncf %234 : vector<16x64xf32> to vector<16x64xbf16>
    %c0_148 = arith.constant 0 : index
    %c0_149 = arith.constant 0 : index
    %236 = vector.load %arg16[%c0_148, %c0_149] : memref<64x32xbf16, #tpu.memory_space<vmem>>, vector<64x32xbf16>
    %cst_150 = arith.constant dense<0.000000e+00> : vector<16x32xf32>
    %237 = tpu.matmul %235, %236, %cst_150 {dimension_numbers = #tpu.dot_dimension_numbers<[1], [0], [0], [1], [0, 0, 1, 1], [], []>} : vector<16x64xbf16>, vector<64x32xbf16>, vector<16x32xf32> -> vector<16x32xf32>
    %c0_151 = arith.constant 0 : index
    %c0_152 = arith.constant 0 : index
    %238 = vector.load %arg17[%c0_151, %c0_152] : memref<1x32xf32, #tpu.memory_space<vmem>>, vector<1x32xf32>
    %239 = vector.broadcast %238 : vector<1x32xf32> to vector<16x32xf32>
    %240 = arith.addf %237, %239 : vector<16x32xf32>
    %241 = arith.addf %191, %240 : vector<16x32xf32>
    %c0_153 = arith.constant 0 : index
    %c0_154 = arith.constant 0 : index
    %c0_155 = arith.constant 0 : index
    %242 = vector.load %arg18[%c0_153, %c0_154, %c0_155] : memref<1x16x32xf32, #tpu.memory_space<vmem>>, vector<1x16x32xf32>
    %243 = vector.shape_cast %242 : vector<1x16x32xf32> to vector<16x32xf32>
    %244 = vector.shape_cast %241 : vector<16x32xf32> to vector<1x16x32xf32>
    tpu.vector_store %arg18[%c0_153, %c0_154, %c0_155], %244 {strides = array<i32>} : memref<1x16x32xf32, #tpu.memory_space<vmem>>, vector<1x16x32xf32>,
    return
  }
  func.func @transform_0(%arg0: i32) -> (i32, i32, i32) {
    %c0_i32 = arith.constant 0 : i32
    %c0_i32_0 = arith.constant 0 : i32
    %c0_i32_1 = arith.constant 0 : i32
    return %arg0, %c0_i32, %c0_i32_0 : i32, i32, i32
  }
  func.func @transform_1(%arg0: i32) -> (i32, i32) {
    %c0_i32 = arith.constant 0 : i32
    %c0_i32_0 = arith.constant 0 : i32
    %c0_i32_1 = arith.constant 0 : i32
    return %c0_i32, %c0_i32_0 : i32, i32
  }
  func.func @transform_2(%arg0: i32) -> (i32, i32) {
    %c0_i32 = arith.constant 0 : i32
    %c0_i32_0 = arith.constant 0 : i32
    %c0_i32_1 = arith.constant 0 : i32
    return %c0_i32, %c0_i32_0 : i32, i32
  }
  func.func @transform_3(%arg0: i32) -> (i32, i32, i32) {
    %c0_i32 = arith.constant 0 : i32
    %c0_i32_0 = arith.constant 0 : i32
    %c0_i32_1 = arith.constant 0 : i32
    %c0_i32_2 = arith.constant 0 : i32
    return %c0_i32, %c0_i32_0, %c0_i32_1 : i32, i32, i32
  }
  func.func @transform_4(%arg0: i32) -> (i32, i32, i32) {
    %c0_i32 = arith.constant 0 : i32
    %c0_i32_0 = arith.constant 0 : i32
    %c0_i32_1 = arith.constant 0 : i32
    %c0_i32_2 = arith.constant 0 : i32
    return %c0_i32, %c0_i32_0, %c0_i32_1 : i32, i32, i32
  }
  func.func @transform_5(%arg0: i32) -> (i32, i32, i32) {
    %c0_i32 = arith.constant 0 : i32
    %c0_i32_0 = arith.constant 0 : i32
    %c0_i32_1 = arith.constant 0 : i32
    %c0_i32_2 = arith.constant 0 : i32
    return %c0_i32, %c0_i32_0, %c0_i32_1 : i32, i32, i32
  }
  func.func @transform_6(%arg0: i32) -> (i32, i32, i32) {
    %c0_i32 = arith.constant 0 : i32
    %c0_i32_0 = arith.constant 0 : i32
    %c0_i32_1 = arith.constant 0 : i32
    %c0_i32_2 = arith.constant 0 : i32
    return %c0_i32, %c0_i32_0, %c0_i32_1 : i32, i32, i32
  }
  func.func @transform_7(%arg0: i32) -> (i32, i32, i32) {
    %c0_i32 = arith.constant 0 : i32
    %c0_i32_0 = arith.constant 0 : i32
    %c0_i32_1 = arith.constant 0 : i32
    %c0_i32_2 = arith.constant 0 : i32
    return %c0_i32, %c0_i32_0, %c0_i32_1 : i32, i32, i32
  }
  func.func @transform_8(%arg0: i32) -> (i32, i32, i32) {
    %c0_i32 = arith.constant 0 : i32
    %c0_i32_0 = arith.constant 0 : i32
    %c0_i32_1 = arith.constant 0 : i32
    %c0_i32_2 = arith.constant 0 : i32
    return %c0_i32, %c0_i32_0, %c0_i32_1 : i32, i32, i32
  }
  func.func @transform_9(%arg0: i32) -> (i32, i32, i32) {
    %c0_i32 = arith.constant 0 : i32
    %c0_i32_0 = arith.constant 0 : i32
    %c0_i32_1 = arith.constant 0 : i32
    %c0_i32_2 = arith.constant 0 : i32
    return %c0_i32, %c0_i32_0, %c0_i32_1 : i32, i32, i32
  }
  func.func @transform_10(%arg0: i32) -> (i32, i32) {
    %c0_i32 = arith.constant 0 : i32
    %c0_i32_0 = arith.constant 0 : i32
    %c0_i32_1 = arith.constant 0 : i32
    return %c0_i32, %c0_i32_0 : i32, i32
  }
  func.func @transform_11(%arg0: i32) -> (i32, i32) {
    %c0_i32 = arith.constant 0 : i32
    %c0_i32_0 = arith.constant 0 : i32
    %c0_i32_1 = arith.constant 0 : i32
    return %c0_i32, %c0_i32_0 : i32, i32
  }
  func.func @transform_12(%arg0: i32) -> (i32, i32) {
    %c0_i32 = arith.constant 0 : i32
    %c0_i32_0 = arith.constant 0 : i32
    %c0_i32_1 = arith.constant 0 : i32
    return %c0_i32, %c0_i32_0 : i32, i32
  }
  func.func @transform_13(%arg0: i32) -> (i32, i32) {
    %c0_i32 = arith.constant 0 : i32
    %c0_i32_0 = arith.constant 0 : i32
    %c0_i32_1 = arith.constant 0 : i32
    return %c0_i32, %c0_i32_0 : i32, i32
  }
  func.func @transform_14(%arg0: i32) -> (i32, i32) {
    %c0_i32 = arith.constant 0 : i32
    %c0_i32_0 = arith.constant 0 : i32
    %c0_i32_1 = arith.constant 0 : i32
    return %c0_i32, %c0_i32_0 : i32, i32
  }
  func.func @transform_15(%arg0: i32) -> (i32, i32) {
    %c0_i32 = arith.constant 0 : i32
    %c0_i32_0 = arith.constant 0 : i32
    %c0_i32_1 = arith.constant 0 : i32
    return %c0_i32, %c0_i32_0 : i32, i32
  }
  func.func @transform_16(%arg0: i32) -> (i32, i32) {
    %c0_i32 = arith.constant 0 : i32
    %c0_i32_0 = arith.constant 0 : i32
    %c0_i32_1 = arith.constant 0 : i32
    return %c0_i32, %c0_i32_0 : i32, i32
  }
  func.func @transform_17(%arg0: i32) -> (i32, i32, i32) {
    %c0_i32 = arith.constant 0 : i32
    %c0_i32_0 = arith.constant 0 : i32
    %c0_i32_1 = arith.constant 0 : i32
    return %arg0, %c0_i32, %c0_i32_0 : i32, i32, i32
  }
}

</mosaic_0001>

<bundles_post_ra>
// kernel: _forward_impl.4
= control target key start
LH: loop header
LB: loop body
LE: loop exit
PB: predicated region body
PF: predicated region fallthrough
CT: control target
= control target key end

     0   :  { %s433_s15 = smov 0   ;;  %s471_s0 = inlined_call_operand.vmem [shape: f32[2,16,64], index: 0, kind: input, shape index: {}]   ;;  %s472_s1 = inlined_call_operand.vmem [shape: bf16[64,32], index: 1, kind: input, shape index: {}]   ;;  %s473_s2 = inlined_call_operand.vmem [shape: f32[1,32], index: 2, kind: input, shape index: {}]   ;;  %s474_s3 = inlined_call_operand.vmem [shape: f32[1,16,32], index: 3, kind: input, shape index: {}]   ;;  %s475_s4 = inlined_call_operand.vmem [shape: f32[2,16,32], index: 4, kind: output, shape index: {}]  }
   0x1 LB: > { %s348_s16 = sadd.s32 4294967295, %s404_s15   ;;  %p352_p0 = scmp.ge.s32.totalorder %s404_s15, 1  ;;  %s404_s15 = sphi %s433_s15, %s14_s15  }
   0x2   : > { %p162_p1 = scmp.lt.s32.totalorder %s404_s15, 3 }
   0x4   : > { %p163_p2 = pnand %p352_p0, %p162_p1 }
   0x5   : > { %v394_v0 = vld [vmem:[%s472_s1] sm:$0xff] (!%p163_p2)   ;;  %v406_v1 = vmov (!%p163_p2), 0.0   ;;  %v395_v2 = vld [vmem:[%s472_s1 + $0x8] sm:$0xff] (!%p163_p2)   ;;  %vm407_vm0 = vmmov (!%p163_p2), 0   ;;  %p188_p3 = scmp.lt.s32.totalorder (!%p163_p2), %s348_s16, 1  ;;  %v396_v3 = vld [vmem:[%s472_s1 + $0x10] sm:$0xff] (!%p163_p2)  }
   0x6   : > { %166 = sbr.rel (%p163_p2) target bundleno = 241 (0xf1), region = 36  ;;  %372 = vmatprep.subr.bf16.mxu0 (!%p163_p2), %v406_v1  ;;  %380 = vmatprep.mubr.msk.bf16.mxu0 (!%p163_p2), %vm407_vm0, %v406_v1  ;;  %v397_v4 = vld [vmem:[%s472_s1 + $0x18] sm:$0xff] (!%p163_p2)   ;;  %vm241_vm1 = vcmask (!%p163_p2), 523264   ;;  %v357_v8 = vld [vmem:[%s473_s2] ss:$0 sm:$0xff] (!%p163_p2)  ;;  %vm290_vm2 = vcmask (!%p163_p2), 261120  }
   0x7   : > { %373 = vmatpush3.bf16.msra.mxu0 (!%p163_p2), %v394_v0  ;;  %v286_v10 = vld [vmem:[%s474_s3] sm:$0xff] (!%p163_p2)  ;;  %v287_v14 = vld [vmem:[%s474_s3 + $0x8] sm:$0xff] (!%p163_p2) }
   0x8   : > { %374 = vmatprep.subr.bf16.mxu0 (!%p163_p2), %v406_v1 }
   0xb   : > { %375 = vmatpush3.bf16.msra.mxu0 (!%p163_p2), %v395_v2 }
   0xc   : > { %376 = vmatprep.subr.bf16.mxu0 (!%p163_p2), %v406_v1 }
   0xd   : > { %s477_s16 = smov (!%p188_p3, %s348_s16), 1 }
   0xe   : > { %s365_s23 = sshll.u32 %s477_s16, 4 }
   0xf   : > { %s192_s26 = scalar_lea.vmem %s471_s0, %s365_s23  ;;  %377 = vmatpush3.bf16.msra.mxu0 %v396_v3  ;;  %s197_s9 = scalar_lea.vmem %s475_s4, %s365_s23 }
  0x10   : > { %v199_v5 = vld [vmem:[%s192_s26] sm:$0xff]  ;;  %v200_v6 = vld [vmem:[%s192_s26 + $0x8] sm:$0xff]  ;;  %378 = vmatprep.subr.bf16.mxu0 %v406_v1 }
  0x11   : > { %v201_v7 = vpack.c.bf16 %v200_v6, %v199_v5 }
  0x13   : > { %379 = vmatpush3.bf16.msra.mxu0 %v397_v4 }
  0x16   : > { %381 = vmatmul.mubr.msk.bf16.vlgmr.msra.gmra.mrb[0].mxu0 %vm241_vm1, %v201_v7 }
  0xe9   : > { %v279_v9 = vpop.f32.mrb[0].mxu0 }
  0xea   : > { %v280_v11 = vadd.f32 %v357_v8, %v279_v9  ;;  %v382_v12 = vpop.f32.mrb[1].mxu0 }
  0xeb   : > { %v282_v13 = vpop.f32.mrb[2].mxu0 }
  0xec   : > { %v288_v15 = vadd.f32 %v286_v10, %v280_v11  ;;  %v283_v16 = vadd.f32 %v357_v8, %v282_v13  ;;  %v383_v17 = vpop.f32.mrb[3].mxu0 }
  0xee   : > { %291 = vst.msk [vmem:[%s197_s9] sm:$0xff] %vm290_vm2, %v288_v15  ;;  %v289_v18 = vadd.f32 %v287_v14, %v283_v16 }
  0xf0   : > { %292 = vst.msk [vmem:[%s197_s9 + $0x8] sm:$0xff] %vm290_vm2, %v289_v18 }
  0xf1 PF: > { %s14_s15 = sadd.s32 1, %s404_s15  }
  0xf2   : > { %p11_p4 = scmp.ge.s32.totalorder %s14_s15, 4  }
  0xf4   :  { %13 = sbr.rel (!%p11_p4) target bundleno = 1 (0x1), region = 66 }

// kernel: _forward_impl.7
= control target key start
LH: loop header
LB: loop body
LE: loop exit
PB: predicated region body
PF: predicated region fallthrough
CT: control target
= control target key end

     0   :  { %10 = vsyncpa [#allocation3], 0  ;;  %s705_s0 = inlined_call_operand.vmem [shape: f32[2,16,32], index: 0, kind: input, shape index: {}]   ;;  %s706_s1 = inlined_call_operand.vmem [shape: f32[1,32], index: 1, kind: input, shape index: {}]   ;;  %s707_s2 = inlined_call_operand.vmem [shape: f32[1,32], index: 2, kind: input, shape index: {}]   ;;  %s708_s3 = inlined_call_operand.vmem [shape: bf16[32,10], index: 3, kind: input, shape index: {}]   ;;  %s709_s4 = inlined_call_operand.vmem [shape: f32[1,10], index: 4, kind: input, shape index: {}]   ;;  %s710_s5 = inlined_call_operand.hbm [shape: f32[2,1,10], index: 5, kind: output, shape index: {}]  }
   0x1   :  { %12 = vsyncpa [#allocation3 + $0x1], 0  ;;  %s583_s18 = smov 0   ;;  %s585_s19 = smov 0  }
   0x2   :  { %s587_s20 = smov 0   ;;  %s589_s21 = smov 0  }
   0x3 LB: > { %s604_s22 = sadd.s32 4294967295, %s548_s21   ;;  %s413_s23 = sadd.s32 4294967294, %s548_s21   ;;  %s548_s21 = sphi %s589_s21, %s716_s21   ;;  %s544_s20 = sphi %s587_s20, %s715_s20   ;;  %s540_s19 = sphi %s585_s19, %s714_s19   ;;  %s536_s18 = sphi %s583_s18, %s713_s18  }
   0x4   : > { %s608_s24 = sadd.s32 1, %s548_s21   ;;  %s135_s25 = sadd.s32 1, %s544_s20 }
   0x5   : > { %s132_s26 = ssub.s32 %s548_s21, %s608_s24  ;;  %p145_p0 = scmp.ne.s32.totalorder %s544_s20, %s540_s19 }
   0x6   : > { %p133_p1 = scmp.eq.s32.totalorder %s132_s26, 0  ;;  %p146_p2 = scmp.eq.s32.totalorder %s604_s22, 1 }
   0x7   : > { %p151_p3 = scmp.ne.s32.totalorder %s540_s19, %s536_s18  ;;  %p152_p4 = scmp.eq.s32.totalorder %s413_s23, 1 }
   0x8   : > { %s619_s27 = scalar_select %p133_p1, %s544_s20, %s135_s25  }
   0x9   : > { %p621_p5 = por %p146_p2, %p145_p0  ;;  %p625_p6 = por %p152_p4, %p151_p3 }
   0xa   : > { %p416_p7 = scmp.ge.s32.totalorder %s548_s21, 1  ;;  %p190_p8 = scmp.lt.s32.totalorder %s548_s21, 3 }
   0xc   : > { %p191_p9 = pnand %p416_p7, %p190_p8 }
   0xd   : > { %p217_p10 = scmp.lt.s32.totalorder (!%p191_p9), %s604_s22, 1  ;;  %vm227_vm0 = vcmask (!%p191_p9), 261120   ;;  %v480_v14 = vld [vmem:[%s708_s3] sm:$0xff] (!%p191_p9)   ;;  %v550_v15 = vmov (!%p191_p9), 0.0   ;;  %vm551_vm1 = vmmov (!%p191_p9), 0   ;;  %v481_v16 = vld [vmem:[%s708_s3 + $0x8] sm:$0xff] (!%p191_p9)  }
   0xe   : > { %194 = sbr.rel (%p191_p9) target bundleno = 590 (0x24e), region = 40  ;;  %431 = vmatprep.subr.bf16.mxu0 (!%p191_p9), %v550_v15  ;;  %435 = vmatprep.mubr.msk.bf16.mxu0 (!%p191_p9), %vm551_vm1, %v550_v15  ;;  %v419_v24 = vld [vmem:[%s706_s1] ss:$0 sm:$0xff] (!%p191_p9)  ;;  %s215_s23 = sand.u32 (!%p191_p9), 1, %s540_s19   ;;  %vm343_vm2 = vcmask (!%p191_p9), 73728  }
   0xf   : > { %432 = vmatpush3.bf16.msra.mxu0 (!%p191_p9), %v480_v14  ;;  %v420_v28 = vld [vmem:[%s707_s2] ss:$0 sm:$0xff] (!%p191_p9)  ;;  %s552_s12 = smov (!%p191_p9), [#allocation2]  }
  0x10   : > { %433 = vmatprep.subr.bf16.mxu0 (!%p191_p9), %v550_v15  ;;  %v287_v44 = vld [vmem:[%s709_s4] sm:$0x1] (!%p191_p9)  ;;  %s490_s13 = sshll.u32 (!%p191_p9), %s552_s12, 4  ;;  %s491_s13 = int_to_ptr.vmem [resolvable:$false] %s490_s13 }
  0x11   : > { %s492_s14 = scalar_lea.vmem (!%p191_p9), %s491_s13, 32 }
  0x13   : > { %434 = vmatpush3.bf16.msra.mxu0 (!%p191_p9), %v481_v16 }
  0x15   : > { %s218_s30 = scalar_select %p217_p10, %s604_s22, 1 }
  0x17   : > { %s427_s6 = sshll.u32 %s218_s30, 4  ;;  %s424_s30 = sshll.u32 %s604_s22, 4 }
  0x18   : > { %s221_s9 = scalar_lea.vmem %s705_s0, %s427_s6  ;;  %s216_s6 = scalar_lea.vmem [#allocation2], %s215_s23 }
  0x19   : > { %v223_v0 = vld [vmem:[%s221_s9] sm:$0xff]  ;;  %v224_v1 = vld [vmem:[%s221_s9 + $0x8] sm:$0xff]  ;;  %s358_s7 = sshll.u32 %s216_s6, 4  ;;  %s663_s10 = scalar_lea.hbm %s710_s5, %s424_s30  ;;  %s665_s7 = int_to_ptr.vmem [resolvable:$true] %s358_s7 }
  0x1a   : > { %v228_v2 = vsel %vm227_vm0, %v223_v0, 0.0  ;;  %v231_v3 = vsel %vm227_vm0, %v224_v1, 0.0  ;;  %s346_s22 = scalar_lea.sflag [#allocation3], %s215_s23  ;;  %s486_s11 = scalar_lea.vmem %s665_s7, 16 }
  0x1b   : > { %229 = vadd.xlane.f32.xlu0 %v228_v2  ;;  %p487_p11 = scmp.ne.s32.totalorder %s665_s7, %s486_s11  ;;  %p493_p0 = scmp.lt.s32.totalorder %s665_s7, %s491_s13 }
  0x1c   : > { %p494_p1 = scmp.lt.s32.totalorder %s492_s14, %s486_s11 }
  0x1d   : > { %p488_p12 = pnand %p487_p11, %p621_p5 }
  0x1e   : > { %p495_p2 = por %p494_p1, %p493_p0 }
  0x1f   : > { %232 = vadd.xlane.f32.xlu0 %v231_v3  ;;  %p489_p13 = pneg %p488_p12 }
  0x21   : > { %p496_p3 = pnand %p495_p2, %p489_p13 }
  0xa8   : > { %v230_v4 = vpop.xlane.xlu0 %229 }
  0xa9   : > { %v235_v5 = vmul.f32 0.03125, %v230_v4 }
  0xab   : > { %v237_v6 = vsub.f32 %v223_v0, %v235_v5 }
  0xac   : > { %v233_v7 = vpop.xlane.xlu0 %232 }
  0xad   : > { %v236_v8 = vmul.f32 0.03125, %v233_v7  ;;  %v239_v9 = vmul.f32 %v237_v6, %v237_v6 }
  0xaf   : > { %v238_v10 = vsub.f32 %v224_v1, %v236_v8  ;;  %v241_v11 = vsel %vm227_vm0, %v239_v9, 0.0 }
  0xb0   : > { %242 = vadd.xlane.f32.xlu1 %v241_v11 }
  0xb1   : > { %v240_v12 = vmul.f32 %v238_v10, %v238_v10 }
  0xb3   : > { %v244_v13 = vsel %vm227_vm0, %v240_v12, 0.0 }
  0xb4   : > { %245 = vadd.xlane.f32.xlu1 %v244_v13 }
 0x13d   : > { %v243_v17 = vpop.xlane.xlu1 %242 }
 0x13e   : > { %v247_v18 = vmul.f32 0.03125, %v243_v17 }
 0x140   : > { %v249_v19 = vadd.f32 1e-06, %v247_v18 }
 0x141   : > { %v246_v20 = vpop.xlane.xlu1 %245 }
 0x142   : > { %482 = vrsqrt.f32 %v249_v19  ;;  %v248_v21 = vmul.f32 0.03125, %v246_v20 }
 0x144   : > { %v250_v22 = vadd.f32 1e-06, %v248_v21 }
 0x146   : > { %484 = vrsqrt.f32 %v250_v22 }
 0x14c   : > { %v483_v23 = vpop.eup %482 }
 0x14d   : > { %v253_v25 = vmul.f32 %v483_v23, %v237_v6 }
 0x14f   : > { %v261_v26 = vmul.f32 %v419_v24, %v253_v25 }
 0x150   : > { %v485_v27 = vpop.eup %484 }
 0x151   : > { %v254_v29 = vmul.f32 %v485_v27, %v238_v10  ;;  %v269_v30 = vadd.f32 %v420_v28, %v261_v26 }
 0x153   : > { %v262_v31 = vmul.f32 %v419_v24, %v254_v29  ;;  %v271_v33 = vsel %vm227_vm0, %v269_v30, 0.0 }
 0x155   : > { %v270_v32 = vadd.f32 %v420_v28, %v262_v31 }
 0x157   : > { %v272_v34 = vsel %vm227_vm0, %v270_v32, 0.0 }
 0x158   : > { %v273_v35 = vadd.f32 %v272_v34, %v271_v33 }
 0x15a   : > { %v274_v36 = vrot.slane %v273_v35, 4 }
 0x15c   : > { %v275_v37 = vadd.f32 %v274_v36, %v273_v35 }
 0x15e   : > { %v276_v38 = vrot.slane %v275_v37, 2 }
 0x160   : > { %v277_v39 = vadd.f32 %v276_v38, %v275_v37 }
 0x162   : > { %v278_v40 = vrot.slane %v277_v39, 1 }
 0x164   : > { %v279_v41 = vadd.f32 %v278_v40, %v277_v39 }
 0x166   : > { %v281_v42 = vmul.f32 0.0625, %v279_v41 }
 0x168   : > { %v282_v43 = vpack.c.bf16 %v281_v42, %v281_v42 }
 0x16a   : > { %436 = vmatmul.mubr.msk.bf16.vlgmr.msra.gmra.mrb[0].mxu0 %vm227_vm0, %v282_v43 }
 0x23d   : > { %v337_v45 = vpop.f32.mrb[0].mxu0 }
 0x23e   : > { %v338_v46 = vadd.f32 %v337_v45, %v287_v44  ;;  %v437_v47 = vpop.f32.mrb[1].mxu0 }
 0x23f   : > { %v340_v48 = vpop.f32.mrb[2].mxu0 }
 0x240   : > { %v438_v49 = vpop.f32.mrb[3].mxu0  ;;  %344 = vst.msk [vmem:[%s216_s6] sm:$0x1] %vm343_vm2, %v338_v46 }
 0x241   : > { %499 = shalt.err (!%p496_p3)
}
 0x242   : > { %s500_s15 = scalar_lea.hbm %s663_s10, 16  ;;  %s504_s23 = scalar_lea.hbm %s710_s5, 32 }
 0x243   : > { %p501_p4 = scmp.ne.s32.totalorder %s663_s10, %s500_s15  ;;  %p505_p9 = scmp.lt.u32.totalorder %s663_s10, %s710_s5 }
 0x244   : > { %p506_p10 = scmp.lt.u32.totalorder %s504_s23, %s500_s15  ;;  %p508_p12 = scmp.lt.u32.totalorder %s500_s15, %s663_s10 }
 0x245   : > { %p502_p7 = pnand %p501_p4, %p621_p5 }
 0x246   : > { %p507_p11 = por %p506_p10, %p505_p9 }
 0x247   : > { %p503_p8 = pneg %p502_p7 }
 0x248   : > { %p509_p13 = por %p508_p12, %p507_p11 }
 0x24a   : > { %p510_p0 = pnand %p509_p13, %p503_p8 }
 0x24c   : > { %513 = shalt.err (!%p510_p0)
}
 0x24d   : > { %439 = dma.vmem_to_hbm [thread:$0]  (%p621_p5), %s665_s7, 16, %s663_s10, %s346_s22  }
 0x24e PF: > { %p445_p1 = scmp.ge.s32.totalorder %s548_s21, 2  ;;  %s370_s30 = sand.u32 1, %s536_s18  }
 0x24f   : > { %s371_s6 = scalar_lea.sflag [#allocation3], %s370_s30 }
 0x250   : > { %p442_p2 = pnand %p445_p1, %p625_p6 }
 0x252   : > { %531 = dma.done.wait (!%p442_p2), %s371_s6, 16  }
 0x253   : > { %533 = vsyncadd (!%p442_p2), %s371_s6, 4294967280  ;;  %p15_p3 = scmp.ge.s32.totalorder %s608_s24, 4   ;;  %s713_s18 = smov %s540_s19 }
 0x254   : > { %s714_s19 = smov %s544_s20  ;;  %s715_s20 = smov %s619_s27 }
 0x255   : > { %s716_s21 = smov %s608_s24  ;;  %17 = sbr.rel (!%p15_p3) target bundleno = 3 (0x3), region = 75 }
 0x25c   :  { %375 = vsyncpa [#allocation3], 1 }
 0x25d   :  { %377 = vsyncpa [#allocation3 + $0x1], 1 }

// kernel: _forward_impl.5
= control target key start
LH: loop header
LB: loop body
LE: loop exit
PB: predicated region body
PF: predicated region fallthrough
CT: control target
= control target key end

     0   :  { %s3303_s24 = smov 0   ;;  %s3687_s0 = inlined_call_operand.vmem [shape: f32[2,16,32], index: 0, kind: input, shape index: {}]   ;;  %s3688_s1 = inlined_call_operand.vmem [shape: f32[1,32], index: 1, kind: input, shape index: {}, may-alias: {1,11}]   ;;  %s3689_s2 = inlined_call_operand.vmem [shape: f32[1,32], index: 2, kind: input, shape index: {}, may-alias: {2,12,16}]   ;;  %s3690_s3 = inlined_call_operand.vmem [shape: bf16[4,32,8], index: 3, kind: input, shape index: {}]   ;;  %s3691_s4 = inlined_call_operand.vmem [shape: bf16[4,32,8], index: 4, kind: input, shape index: {}]   ;;  %s3692_s5 = inlined_call_operand.vmem [shape: bf16[4,32,8], index: 5, kind: input, shape index: {}]   ;;  %s3693_s6 = inlined_call_operand.vmem [shape: f32[4,1,8], index: 6, kind: input, shape index: {}]   ;;  %s3694_s7 = inlined_call_operand.vmem [shape: f32[4,1,8], index: 7, kind: input, shape index: {}]   ;;  %s3695_s8 = inlined_call_operand.vmem [shape: f32[4,1,8], index: 8, kind: input, shape index: {}]   ;;  %s3696_s9 = inlined_call_operand.vmem [shape: bf16[4,8,32], index: 9, kind: input, shape index: {}]   ;;  %s3697_s10 = inlined_call_operand.vmem [shape: f32[1,32], index: 10, kind: input, shape index: {}]   ;;  %s3698_s11 = inlined_call_operand.vmem [shape: f32[1,32], index: 11, kind: input, shape index: {}, may-alias: {1,11}]   ;;  %s3699_s12 = inlined_call_operand.vmem [shape: f32[1,32], index: 12, kind: input, shape index: {}, may-alias: {2,12,16}]   ;;  %s3700_s13 = inlined_call_operand.vmem [shape: bf16[32,64], index: 13, kind: input, shape index: {}]   ;;  %s3701_s14 = inlined_call_operand.vmem [shape: f32[1,64], index: 14, kind: input, shape index: {}]   ;;  %s3702_s15 = inlined_call_operand.vmem [shape: bf16[64,32], index: 15, kind: input, shape index: {}]   ;;  %s3703_s16 = inlined_call_operand.vmem [shape: f32[1,32], index: 16, kind: input, shape index: {}, may-alias: {2,12,16}]   ;;  %s3704_s17 = inlined_call_operand.vmem [shape: f32[2,16,32], index: 17, kind: output, shape index: {}]  }
   0x1   :  { %3705 = sst [smem:[#allocation2_spill]] %s3687_s0 }
   0x2   :  { %3706 = sst [smem:[#allocation3_spill]] %s3688_s1 }
   0x3 LB: > { %s2647_s25 = sadd.s32 4294967295, %s3209_s24   ;;  %p2651_p0 = scmp.ge.s32.totalorder %s3209_s24, 1  ;;  %s3209_s24 = sphi %s3303_s24, %s27_s24  }
   0x4   : > { %p487_p1 = scmp.lt.s32.totalorder %s3209_s24, 3 }
   0x6   : > { %p488_p2 = pnand %p2651_p0, %p487_p1 }
   0x7   : > { %p539_p3 = scmp.lt.s32.totalorder (!%p488_p2), %s2647_s25, 1  ;;  %vm554_vm0 = vcmask (!%p488_p2), 261120   ;;  %s3707_s29 = sld [smem:[#allocation2_spill]] (!%p488_p2)  ;;  %v3129_v14 = vld [vmem:[%s3690_s3] sm:$0xff] (!%p488_p2)   ;;  %v3211_v16 = vmov (!%p488_p2), 0.0   ;;  %v3131_v17 = vld [vmem:[%s3690_s3 + $0x8] sm:$0xff] (!%p488_p2)  }
   0x8   : > { %491 = sbr.rel (%p488_p2) target bundleno = 5014 (0x1396), region = 88  ;;  %v3130_v15 = vld [vmem:[%s3691_s4] sm:$0xff] (!%p488_p2)   ;;  %2883 = vmatprep.subr.bf16.mxu0 (!%p488_p2), %v3211_v16  ;;  %2891 = vmatprep.subr.bf16.mxu1 (!%p488_p2), %v3211_v16  ;;  %v3132_v18 = vld [vmem:[%s3691_s4 + $0x8] sm:$0xff] (!%p488_p2)   ;;  %vm3212_vm1 = vmmov (!%p488_p2), 0   ;;  %v3135_v38 = vld [vmem:[%s3690_s3 + $0x10] sm:$0xff] (!%p488_p2)   ;;  %vm796_vm2 = vcmask (!%p488_p2), 64512  }
   0x9   : > { %2884 = vmatpush3.bf16.msra.mxu0 (!%p488_p2), %v3129_v14  ;;  %2892 = vmatpush3.bf16.msra.mxu1 (!%p488_p2), %v3130_v15  ;;  %v2657_v31 = vld [vmem:[%s3689_s2] ss:$0 sm:$0xff] (!%p488_p2)  ;;  %v3134_v37 = vld [vmem:[%s3692_s5 + $0x8] sm:$0xff] (!%p488_p2)   ;;  %v3136_v39 = vld [vmem:[%s3690_s3 + $0x18] sm:$0xff] (!%p488_p2)   ;;  %vm884_vm4 = vcmask (!%p488_p2), 130048   ;;  %vm1386_vm5 = vcmask (!%p488_p2), 1043456  }
   0xa   : > { %2885 = vmatprep.subr.bf16.mxu0 (!%p488_p2), %v3211_v16  ;;  %2893 = vmatprep.subr.bf16.mxu1 (!%p488_p2), %v3211_v16  ;;  %v3133_v35 = vld [vmem:[%s3692_s5] sm:$0xff] (!%p488_p2)   ;;  %v3137_v40 = vld [vmem:[%s3692_s5 + $0x10] sm:$0xff] (!%p488_p2)   ;;  %v3138_v41 = vld [vmem:[%s3692_s5 + $0x18] sm:$0xff] (!%p488_p2)   ;;  %vm2543_vm6 = vcmask (!%p488_p2), 523264  }
   0xb   : > { %2887 = vmatprep.mubr.msk.bf16.mxu0 (!%p488_p2), %vm3212_vm1, %v3211_v16  ;;  %2895 = vmatprep.mubr.msk.bf16.mxu1 (!%p488_p2), %vm3212_vm1, %v3211_v16  ;;  %v2658_v42 = vld [vmem:[%s3693_s6] ss:$0 sm:$0xff] (!%p488_p2)  ;;  %vm3407_vm3 = vmpackc.low (!%p488_p2), %vm796_vm2, %vm796_vm2 }
   0xc   : > { %v2662_v44 = vld [vmem:[%s3694_s7] ss:$0 sm:$0xff] (!%p488_p2) }
   0xd   : > { %2886 = vmatpush3.bf16.msra.mxu0 (!%p488_p2), %v3131_v17  ;;  %2894 = vmatpush3.bf16.msra.mxu1 (!%p488_p2), %v3132_v18  ;;  %v2666_v58 = vld [vmem:[%s3695_s8] ss:$0 sm:$0xff] (!%p488_p2) }
   0xe   : > { %2899 = vmatprep.subr.bf16.mxu0 (!%p488_p2), %v3211_v16 }
   0xf   : > { %s3712_s25 = smov (!%p539_p3, %s2647_s25), 1 }
  0x10   : > { %s2797_s26 = sshll.u32 %s3712_s25, 4 }
  0x11   : > { %s543_s0 = scalar_lea.vmem %s3707_s29, %s2797_s26  ;;  %s3708_s29 = sld [smem:[#allocation3_spill]] }
  0x12   : > { %v3319_v0 = vld [vmem:[%s543_s0] sm:$0xff]  ;;  %v3321_v1 = vld [vmem:[%s543_s0 + $0x8] sm:$0xff]  ;;  %s548_s18 = scalar_lea.vmem %s3704_s17, %s2797_s26 }
  0x13   : > { %v555_v2 = vsel %vm554_vm0, %v3319_v0, 0.0  ;;  %v558_v3 = vsel %vm554_vm0, %v3321_v1, 0.0 }
  0x14   : > { %556 = vadd.xlane.f32.xlu0 %v555_v2 }
  0x17   : > { %v2656_v27 = vld [vmem:[%s3708_s29] ss:$0 sm:$0xff] }
  0x18   : > { %559 = vadd.xlane.f32.xlu0 %v558_v3 }
  0xa1   : > { %v557_v4 = vpop.xlane.xlu0 %556 }
  0xa2   : > { %v562_v5 = vmul.f32 0.03125, %v557_v4 }
  0xa4   : > { %v564_v6 = vsub.f32 %v3319_v0, %v562_v5 }
  0xa5   : > { %v560_v7 = vpop.xlane.xlu0 %559 }
  0xa6   : > { %v563_v8 = vmul.f32 0.03125, %v560_v7  ;;  %v566_v9 = vmul.f32 %v564_v6, %v564_v6 }
  0xa8   : > { %v565_v10 = vsub.f32 %v3321_v1, %v563_v8  ;;  %v568_v11 = vsel %vm554_vm0, %v566_v9, 0.0  ;;  %v2681_v8 = vld [vmem:[%s3693_s6 + $0x1] ss:$0 sm:$0xff] }
  0xa9   : > { %569 = vadd.xlane.f32.xlu1 %v568_v11 }
  0xaa   : > { %v567_v12 = vmul.f32 %v565_v10, %v565_v10 }
  0xac   : > { %v571_v13 = vsel %vm554_vm0, %v567_v12, 0.0  ;;  %v2699_v12 = vld [vmem:[%s3695_s8 + $0x1] ss:$0 sm:$0xff] }
  0xad   : > { %572 = vadd.xlane.f32.xlu1 %v571_v13 }
 0x136   : > { %v570_v19 = vpop.xlane.xlu1 %569 }
 0x137   : > { %v574_v20 = vmul.f32 0.03125, %v570_v19 }
 0x139   : > { %v576_v21 = vadd.f32 1e-06, %v574_v20 }
 0x13a   : > { %v573_v22 = vpop.xlane.xlu1 %572 }
 0x13b   : > { %3159 = vrsqrt.f32 %v576_v21  ;;  %v575_v23 = vmul.f32 0.03125, %v573_v22 }
 0x13d   : > { %v577_v24 = vadd.f32 1e-06, %v575_v23 }
 0x13f   : > { %3161 = vrsqrt.f32 %v577_v24 }
 0x145   : > { %v3160_v25 = vpop.eup %3159 }
 0x146   : > { %v580_v26 = vmul.f32 %v3160_v25, %v564_v6 }
 0x148   : > { %v588_v29 = vmul.f32 %v2656_v27, %v580_v26 }
 0x149   : > { %v3162_v28 = vpop.eup %3161 }
 0x14a   : > { %v581_v30 = vmul.f32 %v3162_v28, %v565_v10  ;;  %v596_v33 = vadd.f32 %v2657_v31, %v588_v29 }
 0x14c   : > { %v589_v32 = vmul.f32 %v2656_v27, %v581_v30 }
 0x14e   : > { %v597_v34 = vadd.f32 %v2657_v31, %v589_v32 }
 0x150   : > { %v3361_v36 = vpack.c.bf16 %v597_v34, %v596_v33 }
 0x152   : > { %2888 = vmatmul.mubr.msk.bf16.vlgmr.msra.gmra.mrb[0].mxu0 %vm554_vm0, %v3361_v36  ;;  %2896 = vmatmul.mubr.msk.bf16.vlgmr.msra.gmra.mrb[0].mxu1 %vm554_vm0, %v3361_v36 }
 0x153   : > { %2900 = vmatpush3.bf16.msra.mxu0 %v3133_v35  ;;  %2903 = vmatprep.mubr.msk.bf16.mxu0 %vm3212_vm1, %v3211_v16 }
 0x154   : > { %2901 = vmatprep.subr.bf16.mxu0 %v3211_v16 }
 0x157   : > { %2902 = vmatpush3.bf16.msra.mxu0 %v3134_v37 }
 0x158   : > { %2921 = vmatprep.subr.bf16.mxu0 %v3211_v16 }
 0x15a   : > { %2904 = vmatmul.mubr.msk.bf16.vlgmr.msra.gmra.mrb[4].mxu0 %vm554_vm0, %v3361_v36 }
 0x15b   : > { %2922 = vmatpush3.bf16.msra.mxu0 %v3135_v38  ;;  %2925 = vmatprep.mubr.msk.bf16.mxu0 %vm3212_vm1, %v3211_v16 }
 0x15c   : > { %2923 = vmatprep.subr.bf16.mxu0 %v3211_v16 }
 0x15f   : > { %2924 = vmatpush3.bf16.msra.mxu0 %v3136_v39 }
 0x160   : > { %2937 = vmatprep.subr.bf16.mxu0 %v3211_v16 }
 0x162   : > { %2926 = vmatmul.mubr.msk.bf16.vlgmr.msra.gmra.mrb[8].mxu0 %vm554_vm0, %v3361_v36 }
 0x163   : > { %2938 = vmatpush3.bf16.msra.mxu0 %v3137_v40  ;;  %2941 = vmatprep.mubr.msk.bf16.mxu0 %vm3212_vm1, %v3211_v16 }
 0x164   : > { %2939 = vmatprep.subr.bf16.mxu0 %v3211_v16 }
 0x167   : > { %2940 = vmatpush3.bf16.msra.mxu0 %v3138_v41  ;;  %v3139_v41 = vld [vmem:[%s3691_s4 + $0x10] sm:$0xff]  }
 0x16a   : > { %2942 = vmatmul.mubr.msk.bf16.vlgmr.msra.gmra.mrb[12].mxu0 %vm554_vm0, %v3361_v36 }
 0x225   : > { %v659_v43 = vpop.f32.mrb[0].mxu0  ;;  %v725_v45 = vpop.f32.mrb[0].mxu1 }
 0x226   : > { %v660_v46 = vadd.f32 %v2658_v42, %v659_v43  ;;  %v2889_v47 = vpop.f32.mrb[1].mxu0  ;;  %v2897_v48 = vpop.f32.mrb[1].mxu1  ;;  %v726_v52 = vadd.f32 %v2662_v44, %v725_v45  ;;  %v3140_v43 = vld [vmem:[%s3691_s4 + $0x18] sm:$0xff]  }
 0x227   : > { %v662_v49 = vpop.f32.mrb[2].mxu0  ;;  %v728_v50 = vpop.f32.mrb[2].mxu1 }
 0x228   : > { %v666_v51 = vmul.f32 0.35355338, %v660_v46  ;;  %v729_v53 = vadd.f32 %v2662_v44, %v728_v50  ;;  %v2890_v54 = vpop.f32.mrb[3].mxu0  ;;  %v2898_v55 = vpop.f32.mrb[3].mxu1  ;;  %v663_v60 = vadd.f32 %v2658_v42, %v662_v49  ;;  %v2690_v49 = vld [vmem:[%s3694_s7 + $0x1] ss:$0 sm:$0xff] }
 0x22a   : > { %v3079_v57 = vpack.c.bf16 %v729_v53, %v726_v52  ;;  %2911 = vmatprep.mubr.msk.f32.mxu1 %vm796_vm2, %v666_v51  ;;  %v667_v4 = vmul.f32 0.35355338, %v663_v60 }
 0x22c   : > { %3081 = vmatprep.subr.msk.bf16.mxu1 %vm3407_vm3, %v3079_v57 }
 0x22d   : > { %v789_v59 = vpop.f32.mrb[4].mxu0  ;;  %3084 = vmatpush3.bf16.xpose.msk.msra.mxu1 %vm3407_vm3, %v3079_v57 }
 0x22e   : > { %v2905_v61 = vpop.f32.mrb[5].mxu0  ;;  %v790_v63 = vadd.f32 %v2666_v58, %v789_v59 }
 0x22f   : > { %v792_v62 = vpop.f32.mrb[6].mxu0 }
 0x230   : > { %v793_v2 = vadd.f32 %v2666_v58, %v792_v62  ;;  %v2906_v3 = vpop.f32.mrb[7].mxu0 }
 0x232   : > { %v3085_v5 = vpack.c.bf16 %v793_v2, %v790_v63 }
 0x234   : > { %2912 = vmatmul.mubr.msk.f32.vlgmr.msra.gmra.mrb[4].mxu1 %vm796_vm2, %v667_v4  ;;  %3086 = vmatprep.subr.bf16.mxu1 %v3085_v5 }
 0x235   : > { %3088 = vmatpush3.bf16.msra.mxu1 %v3085_v5  ;;  %v1049_v6 = vpop.f32.mrb[8].mxu0 }
 0x236   : > { %v2927_v7 = vpop.f32.mrb[9].mxu0  ;;  %2929 = vmatprep.subr.bf16.mxu1 %v3211_v16  ;;  %v1050_v44 = vadd.f32 %v2681_v8, %v1049_v6 }
 0x237   : > { %v1052_v9 = vpop.f32.mrb[10].mxu0 }
 0x238   : > { %v3424_v10 = vadd.f32 %v2681_v8, %v1052_v9  ;;  %v2928_v11 = vpop.f32.mrb[11].mxu0  ;;  %v1056_v45 = vmul.f32 0.35355338, %v1050_v44 }
 0x23a   : > { %v1057_v58 = vmul.f32 0.35355338, %v3424_v10 }
 0x23d   : > { %v1183_v13 = vpop.f32.mrb[12].mxu0 }
 0x23e   : > { %v2943_v14 = vpop.f32.mrb[13].mxu0  ;;  %v1184_v17 = vadd.f32 %v2699_v12, %v1183_v13 }
 0x23f   : > { %v1186_v15 = vpop.f32.mrb[14].mxu0  ;;  %v989_v14 = vld [vmem:[%s3696_s9] sm:$0xf] }
 0x240   : > { %v1187_v18 = vadd.f32 %v2699_v12, %v1186_v15  ;;  %v2944_v19 = vpop.f32.mrb[15].mxu0 }
 0x241   : > { %v1435_v19 = vsel %vm1386_vm5, %v989_v14, 0 }
 0x242   : > { %v3095_v20 = vpack.c.bf16 %v1187_v18, %v1184_v17 }
 0x244   : > { %3096 = vmatprep.subr.bf16.mxu0 %v3095_v20 }
 0x245   : > { %3098 = vmatpush3.bf16.msra.mxu0 %v3095_v20  ;;  %v3141_v20 = vld [vmem:[%s3691_s4 + $0x20] sm:$0xff]  }
 0x246   : > { %2965 = vmatprep.subr.bf16.mxu0 %v3211_v16 }
 0x307   : > { %v2913_v21 = vpop.f32.mrb[4].mxu1 }
 0x308   : > { %v875_v22 = vpop.f32.mrb[5].mxu1  ;;  %v888_v23 = vsel %vm884_vm4, %v2913_v21, -inf }
 0x309   : > { %889 = vmax.xlane.f32.xlu1 %v888_v23  ;;  %v885_v24 = vsel %vm884_vm4, %v875_v22, -inf }
 0x30a   : > { %886 = vmax.xlane.f32.xlu0 %v885_v24 }
 0x396   : > { %v890_v25 = vpop.xlane.xlu1 %889 }
 0x397   : > { %v892_v26 = vsub.f32 %v2913_v21, %v890_v25  ;;  %v887_v27 = vpop.xlane.xlu0 %886  ;;  %v3142_v21 = vld [vmem:[%s3691_s4 + $0x28] sm:$0xff]  }
 0x398   : > { %v891_v28 = vsub.f32 %v875_v22, %v887_v27  ;;  %v2709_v22 = vld [vmem:[%s3696_s9 + $0x4] sm:$0xf] }
 0x399   : > { %v895_v29 = vmul.f32 1.442695, %v892_v26  ;;  %v1388_v23 = vsel %vm1386_vm5, %v2709_v22, 0  ;;  %v3143_v26 = vld [vmem:[%s3690_s3 + $0x20] sm:$0xff]  }
 0x39a   : > { %v893_v30 = vmul.f32 1.442695, %v891_v28 }
 0x39b   : > { %3163 = vpow2.f32 %v895_v29 }
 0x39c   : > { %3165 = vpow2.f32 %v893_v30  ;;  %v3144_v30 = vld [vmem:[%s3690_s3 + $0x28] sm:$0xff]  }
 0x3a5   : > { %v3164_v31 = vpop.eup %3163 }
 0x3a6   : > { %v3166_v32 = vpop.eup %3165  ;;  %v900_v33 = vsel %vm884_vm4, %v3164_v31, 0.0 }
 0x3a7   : > { %901 = vadd.xlane.f32.xlu1 %v900_v33  ;;  %v897_v34 = vsel %vm884_vm4, %v3166_v32, 0.0  ;;  %v3145_v33 = vld [vmem:[%s3692_s5 + $0x20] sm:$0xff]  }
 0x3a8   : > { %898 = vadd.xlane.f32.xlu0 %v897_v34  ;;  %v2726_v34 = vld [vmem:[%s3694_s7 + $0x2] ss:$0 sm:$0xff] }
 0x434   : > { %v902_v35 = vpop.xlane.xlu1 %901 }
 0x435   : > { %3167 = vrcp.f32 %v902_v35  ;;  %v899_v37 = vpop.xlane.xlu0 %898 }
 0x436   : > { %3169 = vrcp.f32 %v899_v37 }
 0x43f   : > { %v3168_v38 = vpop.eup %3167 }
 0x440   : > { %v3170_v39 = vpop.eup %3169  ;;  %v906_v42 = vmul.f32 %v3168_v38, %v3164_v31  ;;  %v3146_v38 = vld [vmem:[%s3692_s5 + $0x28] sm:$0xff]  }
 0x441   : > { %v905_v40 = vmul.f32 %v3170_v39, %v3166_v32 }
 0x443   : > { %2918 = vmatprep.mubr.msk.f32.mxu1 %vm884_vm4, %v905_v40 }
 0x444   : > { %2919 = vmatmul.mubr.msk.f32.vlgmr.msra.gmra.mrb[6].mxu1 %vm884_vm4, %v906_v42 }
 0x445   : > { %2930 = vmatpush3.bf16.msra.mxu1 %v3139_v41  ;;  %2933 = vmatprep.mubr.msk.bf16.mxu1 %vm3212_vm1, %v3211_v16 }
 0x446   : > { %2931 = vmatprep.subr.bf16.mxu1 %v3211_v16 }
 0x449   : > { %2932 = vmatpush3.bf16.msra.mxu1 %v3140_v43 }
 0x44c   : > { %2934 = vmatmul.mubr.msk.bf16.vlgmr.msra.gmra.mrb[8].mxu1 %vm554_vm0, %v3361_v36 }
 0x44d   : > { %2949 = vmatprep.mubr.msk.f32.mxu1 %vm796_vm2, %v1056_v45 }
 0x517   : > { %v2920_v46 = vpop.f32.mrb[6].mxu1 }
 0x518   : > { %v979_v47 = vpop.f32.mrb[7].mxu1 }
 0x519   : > { %v988_v48 = vpack.c.bf16 %v2920_v46, %v979_v47 }
 0x51f   : > { %v1117_v50 = vpop.f32.mrb[8].mxu1 }
 0x520   : > { %v2935_v51 = vpop.f32.mrb[9].mxu1  ;;  %v1118_v53 = vadd.f32 %v2690_v49, %v1117_v50  ;;  %v2717_v50 = vld [vmem:[%s3693_s6 + $0x2] ss:$0 sm:$0xff] }
 0x521   : > { %v1120_v52 = vpop.f32.mrb[10].mxu1 }
 0x522   : > { %v1121_v54 = vadd.f32 %v2690_v49, %v1120_v52  ;;  %v2936_v55 = vpop.f32.mrb[11].mxu1 }
 0x524   : > { %v3089_v57 = vpack.c.bf16 %v1121_v54, %v1118_v53 }
 0x526   : > { %3091 = vmatprep.subr.msk.bf16.mxu1 %vm3407_vm3, %v3089_v57 }
 0x527   : > { %3094 = vmatpush3.bf16.xpose.msk.msra.mxu1 %vm3407_vm3, %v3089_v57 }
 0x528   : > { %2959 = vmatprep.subr.bf16.mxu1 %v3211_v16 }
 0x52e   : > { %2950 = vmatmul.mubr.msk.f32.vlgmr.msra.gmra.mrb[12].mxu1 %vm796_vm2, %v1057_v58 }
 0x52f   : > { %2961 = vmatprep.mubr.msk.bf16.mxu1 %vm3212_vm1, %v3211_v16  ;;  %2960 = vmatpush3.bf16.msra.mxu1 %v1388_v23 }
 0x530   : > { %2971 = vmatprep.subr.bf16.mxu1 %v3211_v16 }
 0x601   : > { %v2951_v59 = vpop.f32.mrb[12].mxu1 }
 0x602   : > { %v1268_v60 = vpop.f32.mrb[13].mxu1  ;;  %v1280_v61 = vsel %vm884_vm4, %v2951_v59, -inf }
 0x603   : > { %1281 = vmax.xlane.f32.xlu1 %v1280_v61  ;;  %v1277_v62 = vsel %vm884_vm4, %v1268_v60, -inf }
 0x604   : > { %1278 = vmax.xlane.f32.xlu0 %v1277_v62 }
 0x690   : > { %v1282_v63 = vpop.xlane.xlu1 %1281 }
 0x691   : > { %v1284_v2 = vsub.f32 %v2951_v59, %v1282_v63  ;;  %v1279_v3 = vpop.xlane.xlu0 %1278 }
 0x692   : > { %v1283_v4 = vsub.f32 %v1268_v60, %v1279_v3  ;;  %v2735_v60 = vld [vmem:[%s3695_s8 + $0x2] ss:$0 sm:$0xff] }
 0x693   : > { %v1287_v5 = vmul.f32 1.442695, %v1284_v2 }
 0x694   : > { %v1285_v6 = vmul.f32 1.442695, %v1283_v4 }
 0x695   : > { %3171 = vpow2.f32 %v1287_v5 }
 0x696   : > { %3173 = vpow2.f32 %v1285_v6 }
 0x69f   : > { %v3172_v7 = vpop.eup %3171 }
 0x6a0   : > { %v3174_v8 = vpop.eup %3173  ;;  %v1292_v9 = vsel %vm884_vm4, %v3172_v7, 0.0 }
 0x6a1   : > { %1293 = vadd.xlane.f32.xlu1 %v1292_v9  ;;  %v1289_v10 = vsel %vm884_vm4, %v3174_v8, 0.0 }
 0x6a2   : > { %1290 = vadd.xlane.f32.xlu0 %v1289_v10 }
 0x72e   : > { %v1294_v11 = vpop.xlane.xlu1 %1293 }
 0x72f   : > { %3175 = vrcp.f32 %v1294_v11  ;;  %v1291_v12 = vpop.xlane.xlu0 %1290 }
 0x730   : > { %3177 = vrcp.f32 %v1291_v12 }
 0x739   : > { %v3176_v13 = vpop.eup %3175 }
 0x73a   : > { %v3178_v15 = vpop.eup %3177  ;;  %v1298_v18 = vmul.f32 %v3176_v13, %v3172_v7 }
 0x73b   : > { %v1297_v17 = vmul.f32 %v3178_v15, %v3174_v8 }
 0x73d   : > { %2956 = vmatprep.mubr.msk.f32.mxu0 %vm884_vm4, %v1297_v17 }
 0x73e   : > { %2957 = vmatmul.mubr.msk.f32.vlgmr.msra.gmra.mrb[16].mxu0 %vm884_vm4, %v1298_v18 }
 0x73f   : > { %2966 = vmatpush3.bf16.msra.mxu0 %v1435_v19  ;;  %2967 = vmatprep.mubr.msk.bf16.mxu0 %vm3212_vm1, %v3211_v16 }
 0x740   : > { %2979 = vmatprep.subr.bf16.mxu0 %v3211_v16 }
 0x742   : > { %2968 = vmatmul.mubr.msk.bf16.vlgmr.msra.gmra.mrb[20].mxu0 %vm796_vm2, %v988_v48 }
 0x743   : > { %2980 = vmatpush3.bf16.msra.mxu0 %v3141_v20  ;;  %2983 = vmatprep.mubr.msk.bf16.mxu0 %vm3212_vm1, %v3211_v16 }
 0x744   : > { %2981 = vmatprep.subr.bf16.mxu0 %v3211_v16 }
 0x747   : > { %2982 = vmatpush3.bf16.msra.mxu0 %v3142_v21  ;;  %v2745_v21 = vld [vmem:[%s3696_s9 + $0x8] sm:$0xf] }
 0x748   : > { %v1875_v22 = vsel %vm1386_vm5, %v2745_v21, 0 }
 0x74a   : > { %2984 = vmatmul.mubr.msk.bf16.vlgmr.msra.gmra.mrb[24].mxu0 %vm554_vm0, %v3361_v36 }
 0x811   : > { %v2958_v24 = vpop.f32.mrb[16].mxu0 }
 0x812   : > { %v1371_v25 = vpop.f32.mrb[17].mxu0 }
 0x813   : > { %v1380_v27 = vpack.c.bf16 %v2958_v24, %v1371_v25 }
 0x815   : > { %2962 = vmatmul.mubr.msk.bf16.vlgmr.msra.gmra.mrb[16].mxu1 %vm796_vm2, %v1380_v27  ;;  %v1471_v28 = vpop.f32.mrb[20].mxu0 }
 0x816   : > { %v2969_v29 = vpop.f32.mrb[21].mxu0  ;;  %2972 = vmatpush3.bf16.msra.mxu1 %v3143_v26  ;;  %2975 = vmatprep.mubr.msk.bf16.mxu1 %vm3212_vm1, %v3211_v16 }
 0x817   : > { %v1474_v31 = vpop.f32.mrb[22].mxu0  ;;  %2973 = vmatprep.subr.bf16.mxu1 %v3211_v16 }
 0x818   : > { %v2970_v32 = vpop.f32.mrb[23].mxu0 }
 0x819   : > { %v3150_v32 = vld [vmem:[%s3692_s5 + $0x38] sm:$0xff]  }
 0x81a   : > { %2974 = vmatpush3.bf16.msra.mxu1 %v3144_v30  ;;  %v3148_v30 = vld [vmem:[%s3690_s3 + $0x38] sm:$0xff]  }
 0x81b   : > { %2987 = vmatprep.subr.bf16.mxu1 %v3211_v16 }
 0x81d   : > { %2976 = vmatmul.mubr.msk.bf16.vlgmr.msra.gmra.mrb[20].mxu1 %vm554_vm0, %v3361_v36  ;;  %v1605_v35 = vpop.f32.mrb[24].mxu0 }
 0x81e   : > { %v2985_v37 = vpop.f32.mrb[25].mxu0  ;;  %2988 = vmatpush3.bf16.msra.mxu1 %v3145_v33  ;;  %2991 = vmatprep.mubr.msk.bf16.mxu1 %vm3212_vm1, %v3211_v16  ;;  %v1606_v40 = vadd.f32 %v2726_v34, %v1605_v35  ;;  %v3151_v35 = vld [vmem:[%s3691_s4 + $0x30] sm:$0xff]  }
 0x81f   : > { %v1608_v39 = vpop.f32.mrb[26].mxu0  ;;  %2989 = vmatprep.subr.bf16.mxu1 %v3211_v16 }
 0x820   : > { %v1609_v41 = vadd.f32 %v2726_v34, %v1608_v39  ;;  %v2986_v42 = vpop.f32.mrb[27].mxu0  ;;  %v2752_v39 = vld [vmem:[%s3693_s6 + $0x3] ss:$0 sm:$0xff] }
 0x822   : > { %v3099_v43 = vpack.c.bf16 %v1609_v41, %v1606_v40  ;;  %2990 = vmatpush3.bf16.msra.mxu1 %v3146_v38  ;;  %v3152_v38 = vld [vmem:[%s3691_s4 + $0x38] sm:$0xff]  }
 0x823   : > { %3009 = vmatprep.subr.bf16.mxu1 %v3211_v16 }
 0x824   : > { %3101 = vmatprep.subr.msk.bf16.mxu0 %vm3407_vm3, %v3099_v43 }
 0x825   : > { %2992 = vmatmul.mubr.msk.bf16.vlgmr.msra.gmra.mrb[24].mxu1 %vm554_vm0, %v3361_v36  ;;  %3104 = vmatpush3.bf16.xpose.msk.msra.mxu0 %vm3407_vm3, %v3099_v43 }
 0x826   : > { %3011 = vmatprep.mubr.msk.bf16.mxu1 %vm3212_vm1, %v3211_v16  ;;  %3010 = vmatpush3.bf16.msra.mxu1 %v1875_v22 }
 0x827   : > { %3023 = vmatprep.subr.bf16.mxu1 %v3211_v16 }
 0x8e8   : > { %v1424_v44 = vpop.f32.mrb[16].mxu1 }
 0x8e9   : > { %v3524_v45 = vadd.f32 %v1471_v28, %v1424_v44  ;;  %v2963_v46 = vpop.f32.mrb[17].mxu1  ;;  %v3147_v28 = vld [vmem:[%s3690_s3 + $0x30] sm:$0xff]  }
 0x8ea   : > { %v1427_v47 = vpop.f32.mrb[18].mxu1 }
 0x8eb   : > { %v3526_v48 = vadd.f32 %v1474_v31, %v1427_v47  ;;  %v2964_v49 = vpop.f32.mrb[19].mxu1  ;;  %v3149_v31 = vld [vmem:[%s3692_s5 + $0x30] sm:$0xff]  }
 0x8ec   : > { %v2770_v49 = vld [vmem:[%s3695_s8 + $0x3] ss:$0 sm:$0xff] }
 0x8f0   : > { %v1537_v51 = vpop.f32.mrb[20].mxu1 }
 0x8f1   : > { %v1538_v52 = vadd.f32 %v2717_v50, %v1537_v51  ;;  %v2977_v53 = vpop.f32.mrb[21].mxu1 }
 0x8f2   : > { %v1540_v54 = vpop.f32.mrb[22].mxu1 }
 0x8f3   : > { %v1544_v55 = vmul.f32 0.35355338, %v1538_v52  ;;  %v1541_v57 = vadd.f32 %v2717_v50, %v1540_v54  ;;  %v2978_v58 = vpop.f32.mrb[23].mxu1 }
 0x8f5   : > { %v1545_v59 = vmul.f32 0.35355338, %v1541_v57  ;;  %2999 = vmatprep.mubr.msk.f32.mxu0 %vm796_vm2, %v1544_v55 }
 0x8f7   : > { %3000 = vmatmul.mubr.msk.f32.vlgmr.msra.gmra.mrb[18].mxu0 %vm796_vm2, %v1545_v59 }
 0x8f8   : > { %v1671_v61 = vpop.f32.mrb[24].mxu1 }
 0x8f9   : > { %v2993_v62 = vpop.f32.mrb[25].mxu1  ;;  %v1672_v2 = vadd.f32 %v2735_v60, %v1671_v61 }
 0x8fa   : > { %v1674_v63 = vpop.f32.mrb[26].mxu1 }
 0x8fb   : > { %v1675_v3 = vadd.f32 %v2735_v60, %v1674_v63  ;;  %v2994_v4 = vpop.f32.mrb[27].mxu1  ;;  %v2761_v63 = vld [vmem:[%s3694_s7 + $0x3] ss:$0 sm:$0xff] }
 0x8fd   : > { %v3105_v5 = vpack.c.bf16 %v1675_v3, %v1672_v2 }
 0x8ff   : > { %3106 = vmatprep.subr.bf16.mxu0 %v3105_v5 }
 0x900   : > { %3108 = vmatpush3.bf16.msra.mxu0 %v3105_v5 }
 0x901   : > { %3015 = vmatprep.subr.bf16.mxu0 %v3211_v16 }
 0x9ca   : > { %v3001_v6 = vpop.f32.mrb[18].mxu0 }
 0x9cb   : > { %v1756_v7 = vpop.f32.mrb[19].mxu0  ;;  %v1768_v8 = vsel %vm884_vm4, %v3001_v6, -inf }
 0x9cc   : > { %1769 = vmax.xlane.f32.xlu1 %v1768_v8  ;;  %v1765_v9 = vsel %vm884_vm4, %v1756_v7, -inf }
 0x9cd   : > { %1766 = vmax.xlane.f32.xlu0 %v1765_v9 }
 0xa59   : > { %v1770_v10 = vpop.xlane.xlu1 %1769 }
 0xa5a   : > { %v1772_v11 = vsub.f32 %v3001_v6, %v1770_v10  ;;  %v1767_v12 = vpop.xlane.xlu0 %1766 }
 0xa5b   : > { %v1771_v13 = vsub.f32 %v1756_v7, %v1767_v12 }
 0xa5c   : > { %v1775_v14 = vmul.f32 1.442695, %v1772_v11 }
 0xa5d   : > { %v1773_v15 = vmul.f32 1.442695, %v1771_v13 }
 0xa5e   : > { %3179 = vpow2.f32 %v1775_v14 }
 0xa5f   : > { %3181 = vpow2.f32 %v1773_v15 }
 0xa68   : > { %v3180_v17 = vpop.eup %3179 }
 0xa69   : > { %v3182_v18 = vpop.eup %3181  ;;  %v1780_v19 = vsel %vm884_vm4, %v3180_v17, 0.0 }
 0xa6a   : > { %1781 = vadd.xlane.f32.xlu1 %v1780_v19  ;;  %v1777_v20 = vsel %vm884_vm4, %v3182_v18, 0.0 }
 0xa6b   : > { %1778 = vadd.xlane.f32.xlu0 %v1777_v20 }
 0xaf7   : > { %v1782_v23 = vpop.xlane.xlu1 %1781 }
 0xaf8   : > { %3183 = vrcp.f32 %v1782_v23  ;;  %v1779_v24 = vpop.xlane.xlu0 %1778 }
 0xaf9   : > { %3185 = vrcp.f32 %v1779_v24 }
 0xb02   : > { %v3184_v25 = vpop.eup %3183 }
 0xb03   : > { %v3186_v26 = vpop.eup %3185  ;;  %v1786_v29 = vmul.f32 %v3184_v25, %v3180_v17 }
 0xb04   : > { %v1785_v27 = vmul.f32 %v3186_v26, %v3182_v18 }
 0xb06   : > { %3006 = vmatprep.mubr.msk.f32.mxu0 %vm884_vm4, %v1785_v27 }
 0xb07   : > { %3007 = vmatmul.mubr.msk.f32.vlgmr.msra.gmra.mrb[28].mxu0 %vm884_vm4, %v1786_v29 }
 0xb08   : > { %3016 = vmatpush3.bf16.msra.mxu0 %v3147_v28  ;;  %3019 = vmatprep.mubr.msk.bf16.mxu0 %vm3212_vm1, %v3211_v16  ;;  %v2780_v28 = vld [vmem:[%s3696_s9 + $0xc] sm:$0xf] }
 0xb09   : > { %3017 = vmatprep.subr.bf16.mxu0 %v3211_v16  ;;  %v2317_v29 = vsel %vm1386_vm5, %v2780_v28, 0 }
 0xb0c   : > { %3018 = vmatpush3.bf16.msra.mxu0 %v3148_v30 }
 0xb0d   : > { %3031 = vmatprep.subr.bf16.mxu0 %v3211_v16 }
 0xb0f   : > { %3020 = vmatmul.mubr.msk.bf16.vlgmr.msra.gmra.mrb[32].mxu0 %vm554_vm0, %v3361_v36 }
 0xb10   : > { %3032 = vmatpush3.bf16.msra.mxu0 %v3149_v31  ;;  %3035 = vmatprep.mubr.msk.bf16.mxu0 %vm3212_vm1, %v3211_v16 }
 0xb11   : > { %3033 = vmatprep.subr.bf16.mxu0 %v3211_v16 }
 0xb14   : > { %3034 = vmatpush3.bf16.msra.mxu0 %v3150_v32 }
 0xb15   : > { %3067 = vmatprep.subr.bf16.mxu0 %v3211_v16 }
 0xb17   : > { %3036 = vmatmul.mubr.msk.bf16.vlgmr.msra.gmra.mrb[36].mxu0 %vm554_vm0, %v3361_v36 }
 0xb18   : > { %3075 = vmatprep.mubr.msk.bf16.mxu0 %vm3212_vm1, %v3211_v16 }
 0xbda   : > { %v3008_v33 = vpop.f32.mrb[28].mxu0 }
 0xbdb   : > { %v1859_v34 = vpop.f32.mrb[29].mxu0 }
 0xbdc   : > { %v1868_v37 = vpack.c.bf16 %v3008_v33, %v1859_v34 }
 0xbde   : > { %3012 = vmatmul.mubr.msk.bf16.vlgmr.msra.gmra.mrb[28].mxu1 %vm796_vm2, %v1868_v37  ;;  %v2782_v37 = vld [vmem:[%s3697_s10] ss:$0 sm:$0xff] }
 0xbdf   : > { %3024 = vmatpush3.bf16.msra.mxu1 %v3151_v35  ;;  %3027 = vmatprep.mubr.msk.bf16.mxu1 %vm3212_vm1, %v3211_v16 }
 0xbe0   : > { %3025 = vmatprep.subr.bf16.mxu1 %v3211_v16 }
 0xbe2   : > { %v1979_v40 = vpop.f32.mrb[32].mxu0 }
 0xbe3   : > { %v1980_v41 = vadd.f32 %v2752_v39, %v1979_v40  ;;  %v3021_v42 = vpop.f32.mrb[33].mxu0  ;;  %3026 = vmatpush3.bf16.msra.mxu1 %v3152_v38 }
 0xbe4   : > { %v1982_v43 = vpop.f32.mrb[34].mxu0 }
 0xbe5   : > { %v1986_v44 = vmul.f32 0.35355338, %v1980_v41  ;;  %v1983_v46 = vadd.f32 %v2752_v39, %v1982_v43  ;;  %v3022_v47 = vpop.f32.mrb[35].mxu0 }
 0xbe6   : > { %3028 = vmatmul.mubr.msk.bf16.vlgmr.msra.gmra.mrb[32].mxu1 %vm554_vm0, %v3361_v36 }
 0xbe7   : > { %3043 = vmatprep.mubr.msk.f32.mxu1 %vm796_vm2, %v1986_v44 }
 0xbea   : > { %v2113_v50 = vpop.f32.mrb[36].mxu0 }
 0xbeb   : > { %v3037_v51 = vpop.f32.mrb[37].mxu0  ;;  %v2114_v53 = vadd.f32 %v2770_v49, %v2113_v50 }
 0xbec   : > { %v2116_v52 = vpop.f32.mrb[38].mxu0 }
 0xbed   : > { %v2117_v54 = vadd.f32 %v2770_v49, %v2116_v52  ;;  %v3038_v55 = vpop.f32.mrb[39].mxu0 }
 0xbef   : > { %v3115_v57 = vpack.c.bf16 %v2117_v54, %v2114_v53 }
 0xcb1   : > { %v1911_v58 = vpop.f32.mrb[28].mxu1 }
 0xcb2   : > { %v1918_v59 = vadd.f32 %v1911_v58, %v3524_v45  ;;  %v3013_v60 = vpop.f32.mrb[29].mxu1  ;;  %v1987_v45 = vmul.f32 0.35355338, %v1983_v46  ;;  %v3153_v58 = vld [vmem:[%s3700_s13] sm:$0xff]  }
 0xcb3   : > { %v1914_v61 = vpop.f32.mrb[30].mxu1 }
 0xcb4   : > { %v3595_v36 = vadd.f32 %v1914_v61, %v3526_v48  ;;  %v3014_v62 = vpop.f32.mrb[31].mxu1 }
 0xcb9   : > { %v2047_v2 = vpop.f32.mrb[32].mxu1 }
 0xcba   : > { %v3029_v3 = vpop.f32.mrb[33].mxu1  ;;  %v2048_v5 = vadd.f32 %v2761_v63, %v2047_v2 }
 0xcbb   : > { %v2050_v4 = vpop.f32.mrb[34].mxu1 }
 0xcbc   : > { %v2051_v6 = vadd.f32 %v2761_v63, %v2050_v4  ;;  %v3030_v7 = vpop.f32.mrb[35].mxu1  ;;  %v2783_v4 = vld [vmem:[%s3698_s11] ss:$0 sm:$0xff] }
 0xcbe   : > { %v3109_v8 = vpack.c.bf16 %v2051_v6, %v2048_v5 }
 0xcc0   : > { %3111 = vmatprep.subr.msk.bf16.mxu1 %vm3407_vm3, %v3109_v8 }
 0xcc1   : > { %3114 = vmatpush3.bf16.xpose.msk.msra.mxu1 %vm3407_vm3, %v3109_v8 }
 0xcc2   : > { %3116 = vmatprep.subr.bf16.mxu1 %v3115_v57 }
 0xcc8   : > { %3044 = vmatmul.mubr.msk.f32.vlgmr.msra.gmra.mrb[14].mxu1 %vm796_vm2, %v1987_v45  ;;  %v2784_v45 = vld [vmem:[%s3699_s12] ss:$0 sm:$0xff] }
 0xcc9   : > { %3118 = vmatpush3.bf16.msra.mxu1 %v3115_v57 }
 0xcca   : > { %3053 = vmatprep.subr.bf16.mxu1 %v3211_v16 }
 0xd9b   : > { %v3045_v48 = vpop.f32.mrb[14].mxu1 }
 0xd9c   : > { %v2198_v9 = vpop.f32.mrb[15].mxu1  ;;  %v2210_v10 = vsel %vm884_vm4, %v3045_v48, -inf }
 0xd9d   : > { %2211 = vmax.xlane.f32.xlu1 %v2210_v10  ;;  %v2207_v11 = vsel %vm884_vm4, %v2198_v9, -inf }
 0xd9e   : > { %2208 = vmax.xlane.f32.xlu0 %v2207_v11 }
 0xe2a   : > { %v2212_v12 = vpop.xlane.xlu1 %2211 }
 0xe2b   : > { %v2214_v13 = vsub.f32 %v3045_v48, %v2212_v12  ;;  %v2209_v14 = vpop.xlane.xlu0 %2208  ;;  %v3155_v12 = vld [vmem:[%s3702_s15] sm:$0xff]  }
 0xe2c   : > { %v2213_v56 = vsub.f32 %v2198_v9, %v2209_v14  ;;  %3068 = vmatpush3.bf16.msra.mxu0 %v3155_v12  ;;  %v3157_v14 = vld [vmem:[%s3702_s15 + $0x10] sm:$0xff]  }
 0xe2d   : > { %v2217_v15 = vmul.f32 1.442695, %v2214_v13  ;;  %3069 = vmatprep.subr.bf16.mxu0 %v3211_v16  ;;  %v3156_v13 = vld [vmem:[%s3702_s15 + $0x8] sm:$0xff]  }
 0xe2e   : > { %v2215_v17 = vmul.f32 1.442695, %v2213_v56  ;;  %v3158_v56 = vld [vmem:[%s3702_s15 + $0x18] sm:$0xff]  }
 0xe2f   : > { %3187 = vpow2.f32 %v2217_v15  ;;  %v2785_v15 = vld [vmem:[%s3701_s14] ss:$0 sm:$0xff] }
 0xe30   : > { %3189 = vpow2.f32 %v2215_v17  ;;  %3070 = vmatpush3.bf16.msra.mxu0 %v3156_v13 }
 0xe31   : > { %3071 = vmatprep.subr.bf16.mxu0 %v3211_v16 }
 0xe34   : > { %3072 = vmatpush3.bf16.msra.mxu0 %v3157_v14 }
 0xe35   : > { %3073 = vmatprep.subr.bf16.mxu0 %v3211_v16 }
 0xe38   : > { %3074 = vmatpush3.bf16.msra.mxu0 %v3158_v56 }
 0xe39   : > { %v3188_v18 = vpop.eup %3187 }
 0xe3a   : > { %v3190_v19 = vpop.eup %3189  ;;  %v2222_v20 = vsel %vm884_vm4, %v3188_v18, 0.0 }
 0xe3b   : > { %2223 = vadd.xlane.f32.xlu1 %v2222_v20  ;;  %v2219_v21 = vsel %vm884_vm4, %v3190_v19, 0.0 }
 0xe3c   : > { %2220 = vadd.xlane.f32.xlu0 %v2219_v21 }
 0xec8   : > { %v2224_v22 = vpop.xlane.xlu1 %2223 }
 0xec9   : > { %3191 = vrcp.f32 %v2224_v22  ;;  %v2221_v23 = vpop.xlane.xlu0 %2220 }
 0xeca   : > { %3193 = vrcp.f32 %v2221_v23 }
 0xed3   : > { %v3192_v24 = vpop.eup %3191 }
 0xed4   : > { %v3194_v25 = vpop.eup %3193  ;;  %v2228_v27 = vmul.f32 %v3192_v24, %v3188_v18 }
 0xed5   : > { %v2227_v26 = vmul.f32 %v3194_v25, %v3190_v19 }
 0xed7   : > { %3050 = vmatprep.mubr.msk.f32.mxu1 %vm884_vm4, %v2227_v26 }
 0xed8   : > { %3051 = vmatmul.mubr.msk.f32.vlgmr.msra.gmra.mrb[36].mxu1 %vm884_vm4, %v2228_v27 }
 0xed9   : > { %3055 = vmatprep.mubr.msk.bf16.mxu1 %vm3212_vm1, %v3211_v16  ;;  %3054 = vmatpush3.bf16.msra.mxu1 %v2317_v29 }
 0xeda   : > { %3059 = vmatprep.subr.bf16.mxu1 %v3211_v16 }
 0xfab   : > { %v3052_v30 = vpop.f32.mrb[36].mxu1 }
 0xfac   : > { %v2301_v31 = vpop.f32.mrb[37].mxu1 }
 0xfad   : > { %v2310_v32 = vpack.c.bf16 %v3052_v30, %v2301_v31 }
 0xfaf   : > { %3056 = vmatmul.mubr.msk.bf16.vlgmr.msra.gmra.mrb[40].mxu1 %vm796_vm2, %v2310_v32 }
 0xfb0   : > { %3063 = vmatprep.mubr.msk.bf16.mxu1 %vm3212_vm1, %v3211_v16  ;;  %3060 = vmatpush3.bf16.msra.mxu1 %v3153_v58 }
 0xfb1   : > { %3061 = vmatprep.subr.bf16.mxu1 %v3211_v16 }
0x1082   : > { %v2353_v33 = vpop.f32.mrb[40].mxu1 }
0x1083   : > { %v2360_v34 = vadd.f32 %v2353_v33, %v1918_v59  ;;  %v3057_v35 = vpop.f32.mrb[41].mxu1  ;;  %v3154_v59 = vld [vmem:[%s3700_s13 + $0x8] sm:$0xff]  }
0x1084   : > { %v2356_v38 = vpop.f32.mrb[42].mxu1  ;;  %3062 = vmatpush3.bf16.msra.mxu1 %v3154_v59 }
0x1085   : > { %v2362_v39 = vadd.f32 %v2360_v34, %v3319_v0  ;;  %v2361_v40 = vadd.f32 %v2356_v38, %v3595_v36  ;;  %v3058_v41 = vpop.f32.mrb[43].mxu1 }
0x1087   : > { %v3627_v42 = vadd.f32 %v2782_v37, %v2362_v39  ;;  %v2363_v43 = vadd.f32 %v2361_v40, %v3321_v1 }
0x1089   : > { %v3630_v44 = vadd.f32 %v2782_v37, %v2363_v43  ;;  %v2375_v46 = vsel %vm554_vm0, %v3627_v42, 0.0  ;;  %v2789_v43 = vld [vmem:[%s3703_s16] ss:$0 sm:$0xff] }
0x108a   : > { %2376 = vadd.xlane.f32.xlu0 %v2375_v46 }
0x108b   : > { %v2378_v47 = vsel %vm554_vm0, %v3630_v44, 0.0 }
0x108c   : > { %2379 = vadd.xlane.f32.xlu1 %v2378_v47 }
0x1117   : > { %v2377_v49 = vpop.xlane.xlu0 %2376 }
0x1118   : > { %v2381_v50 = vmul.f32 0.03125, %v2377_v49 }
0x1119   : > { %v2380_v0 = vpop.xlane.xlu1 %2379 }
0x111a   : > { %v2383_v51 = vsub.f32 %v3627_v42, %v2381_v50  ;;  %v2382_v52 = vmul.f32 0.03125, %v2380_v0 }
0x111c   : > { %v2384_v53 = vsub.f32 %v3630_v44, %v2382_v52  ;;  %v2385_v54 = vmul.f32 %v2383_v51, %v2383_v51 }
0x111e   : > { %v2387_v1 = vsel %vm554_vm0, %v2385_v54, 0.0  ;;  %v2386_v55 = vmul.f32 %v2384_v53, %v2384_v53 }
0x111f   : > { %2388 = vadd.xlane.f32.xlu0 %v2387_v1 }
0x1120   : > { %v2390_v57 = vsel %vm554_vm0, %v2386_v55, 0.0 }
0x1121   : > { %2391 = vadd.xlane.f32.xlu1 %v2390_v57 }
0x11ac   : > { %v2389_v60 = vpop.xlane.xlu0 %2388 }
0x11ad   : > { %v2393_v61 = vmul.f32 0.03125, %v2389_v60 }
0x11ae   : > { %v2392_v36 = vpop.xlane.xlu1 %2391 }
0x11af   : > { %v2395_v62 = vadd.f32 1e-06, %v2393_v61  ;;  %v2394_v63 = vmul.f32 0.03125, %v2392_v36 }
0x11b1   : > { %3195 = vrsqrt.f32 %v2395_v62  ;;  %v2396_v2 = vadd.f32 1e-06, %v2394_v63 }
0x11b3   : > { %3197 = vrsqrt.f32 %v2396_v2 }
0x11bb   : > { %v3196_v3 = vpop.eup %3195 }
0x11bc   : > { %v2399_v5 = vmul.f32 %v3196_v3, %v2383_v51 }
0x11bd   : > { %v3198_v6 = vpop.eup %3197 }
0x11be   : > { %v2407_v7 = vmul.f32 %v2783_v4, %v2399_v5  ;;  %v2400_v8 = vmul.f32 %v3198_v6, %v2384_v53 }
0x11c0   : > { %v2408_v48 = vmul.f32 %v2783_v4, %v2400_v8  ;;  %v2415_v9 = vadd.f32 %v2784_v45, %v2407_v7 }
0x11c2   : > { %v2416_v10 = vadd.f32 %v2784_v45, %v2408_v48 }
0x11c4   : > { %v2417_v11 = vpack.c.bf16 %v2416_v10, %v2415_v9 }
0x11c6   : > { %3064 = vmatmul.mubr.msk.bf16.vlgmr.msra.gmra.mrb[44].mxu1 %vm554_vm0, %v2417_v11 }
0x1299   : > { %v2478_v17 = vpop.f32.mrb[44].mxu1 }
0x129a   : > { %v2479_v18 = vadd.f32 %v2785_v15, %v2478_v17  ;;  %v3065_v19 = vpop.f32.mrb[45].mxu1 }
0x129b   : > { %v2481_v20 = vpop.f32.mrb[46].mxu1 }
0x129c   : > { %v2485_v21 = vmul.f32 %v2479_v18, %v2479_v18  ;;  %v2482_v22 = vadd.f32 %v2785_v15, %v2481_v20  ;;  %v3066_v23 = vpop.f32.mrb[47].mxu1 }
0x129e   : > { %v2487_v24 = vmul.f32 %v2485_v21, %v2479_v18  ;;  %v2486_v25 = vmul.f32 %v2482_v22, %v2482_v22 }
0x12a0   : > { %v2489_v26 = vmul.f32 0.044715, %v2487_v24  ;;  %v2488_v16 = vmul.f32 %v2486_v25, %v2482_v22 }
0x12a2   : > { %v2491_v27 = vadd.f32 %v2489_v26, %v2479_v18  ;;  %v2490_v28 = vmul.f32 0.044715, %v2488_v16 }
0x12a4   : > { %v2493_v29 = vmul.f32 0.7978846, %v2491_v27  ;;  %v2492_v30 = vadd.f32 %v2490_v28, %v2482_v22 }
0x12a6   : > { %3199 = vtanh.f32 %v2493_v29  ;;  %v2494_v31 = vmul.f32 0.7978846, %v2492_v30 }
0x12a8   : > { %3201 = vtanh.f32 %v2494_v31 }
0x12b0   : > { %v3200_v32 = vpop.eup %3199 }
0x12b1   : > { %v2497_v33 = vadd.f32 1.0, %v3200_v32 }
0x12b2   : > { %v3202_v34 = vpop.eup %3201 }
0x12b3   : > { %v2499_v35 = vmul.f32 0.5, %v2497_v33  ;;  %v2498_v37 = vadd.f32 1.0, %v3202_v34 }
0x12b5   : > { %v2500_v38 = vmul.f32 0.5, %v2498_v37  ;;  %v2501_v39 = vmul.f32 %v2499_v35, %v2479_v18 }
0x12b7   : > { %v2502_v40 = vmul.f32 %v2500_v38, %v2482_v22 }
0x12b9   : > { %v2503_v41 = vpack.c.bf16 %v2502_v40, %v2501_v39 }
0x12bb   : > { %3076 = vmatmul.mubr.msk.bf16.vlgmr.msra.gmra.mrb[40].mxu0 %vm2543_vm6, %v2503_v41 }
0x138e   : > { %v2581_v46 = vpop.f32.mrb[40].mxu0 }
0x138f   : > { %v2582_v47 = vadd.f32 %v2789_v43, %v2581_v46  ;;  %v3077_v49 = vpop.f32.mrb[41].mxu0 }
0x1390   : > { %v2584_v50 = vpop.f32.mrb[42].mxu0 }
0x1391   : > { %v2588_v0 = vadd.f32 %v2582_v47, %v3627_v42  ;;  %v2585_v51 = vadd.f32 %v2789_v43, %v2584_v50  ;;  %v3078_v52 = vpop.f32.mrb[43].mxu0 }
0x1393   : > { %2590 = vst.msk [vmem:[%s548_s18] sm:$0xff] %vm554_vm0, %v2588_v0  ;;  %v2589_v53 = vadd.f32 %v2585_v51, %v3630_v44 }
0x1395   : > { %2591 = vst.msk [vmem:[%s548_s18 + $0x8] sm:$0xff] %vm554_vm0, %v2589_v53 }
0x1396 PF: > { %s27_s24 = sadd.s32 1, %s3209_s24  }
0x1397   : > { %p24_p4 = scmp.ge.s32.totalorder %s27_s24, 4  }
0x1399   :  { %26 = sbr.rel (!%p24_p4) target bundleno = 3 (0x3), region = 139 }

</bundles_post_ra>
